<compile_context>
chip_gen: v7x
topology: tpu7x:2x2x1
jax: 0.10.0
libtpu: 0.0.40
codegen_flags: <defaults>
</compile_context>

<pallas_src>
import jax
import jax.numpy as jnp
from jax.experimental import pallas as pl
from jax.experimental.pallas import tpu as pltpu

D_IN, D_H1, D_H2, D_OUT = 2048, 512, 256, 10
D_OUT_PAD = 128   # lane-dense padded output width (sliced back to 10 in the wrapper)
SUBLANE = 16      # bf16 sublane packing: keep batch tiles 16-row aligned


def _round_up(x, m):
    return (x + m - 1) // m * m


def mlp_kernel(x_ref, w1_ref, b1_ref, w2_ref, b2_ref, w3_ref, b3_ref, o_ref):
    # Layer 1: Linear(2048 -> 512) + ReLU. bf16 MXU inputs, f32 accumulation, f32 bias.
    h1 = jnp.dot(x_ref[...], w1_ref[...], preferred_element_type=jnp.float32)
    h1 = jnp.maximum(h1 + b1_ref[...], 0.0)

    # Dropout(p=0.2): identity in eval/inference mode.
    # TODO(synk): training-mode dropout would use pltpu.prng_seed + pltpu.prng_random_bits.

    # Layer 2: Linear(512 -> 256) + ReLU
    h2 = jnp.dot(h1.astype(jnp.bfloat16), w2_ref[...], preferred_element_type=jnp.float32)
    h2 = jnp.maximum(h2 + b2_ref[...], 0.0)

    # Layer 3: Linear(256 -> 10), lane-padded to 128 (extra weight/bias columns are zero).
    o_ref[...] = (jnp.dot(h2.astype(jnp.bfloat16), w3_ref[...],
                          preferred_element_type=jnp.float32)
                  + b3_ref[...]).astype(o_ref.dtype)


def c10_forward(x, params, *, tile_b=512):
    """x: (B, 2048), ideally bf16 (f32 is quantized once here). params from init_params."""
    w1, b1, w2, b2, w3, b3 = params
    B = x.shape[0]

    # Stream x as bf16 (no-op if the producer already emits bf16, which is the fast path).
    if x.dtype != jnp.bfloat16:
        x = x.astype(jnp.bfloat16)

    # Batch tiling: 16-row aligned (bf16 sublane packing). For moderate B, cap the tile at
    # ceil(B/2) so the grid has >= 2 steps and "parallel" can engage both v7x TensorCores.
    tb = min(tile_b, _round_up(B, SUBLANE))
    if B > 128:
        tb = min(tb, _round_up(-(-B // 2), SUBLANE))
    b_pad = _round_up(B, tb)
    if b_pad != B:
        x = jnp.pad(x, ((0, b_pad - B), (0, 0)))
    grid = (b_pad // tb,)

    def resident(shape):
        # Constant block index -> DMA'd once, stays VMEM-resident; single-buffered since
        # there is nothing to pipeline for a block that never changes.
        return pl.BlockSpec(shape, lambda i: (0, 0), pipeline_mode=pl.Buffered(1))

    flops = 2 * b_pad * (D_IN * D_H1 + D_H1 * D_H2 + D_H2 * D_OUT)
    bytes_accessed = (
        x.size * 2 + b_pad * D_OUT_PAD * 2                 # bf16 x in, bf16 padded out
        + (w1.size + w2.size + w3.size) * 2                # bf16 weights (read once)
        + (b1.size + b2.size + b3.size) * 4                # f32 biases
    )

    out = pl.pallas_call(
        mlp_kernel,
        out_shape=jax.ShapeDtypeStruct((b_pad, D_OUT_PAD), jnp.bfloat16),
        grid=grid,
        in_specs=[
            pl.BlockSpec((tb, D_IN), lambda i: (i, 0)),    # x tile streams over batch
            resident((D_IN, D_H1)),
            resident((1, D_H1)),
            resident((D_H1, D_H2)),
            resident((1, D_H2)),
            resident((D_H2, D_OUT_PAD)),
            resident((1, D_OUT_PAD)),
        ],
        out_specs=pl.BlockSpec((tb, D_OUT_PAD), lambda i: (i, 0)),
        compiler_params=pltpu.CompilerParams(
            dimension_semantics=("parallel",),
            vmem_limit_bytes=32 * 1024 * 1024,
        ),
        cost_estimate=pl.CostEstimate(
            flops=flops, transcendentals=0, bytes_accessed=bytes_accessed),
    )(x, w1, b1, w2, b2, w3, b3)

    # Drop batch padding and the lane padding; return f32 logits like the PyTorch module.
    return out[:B, :D_OUT].astype(jnp.float32)


def init_params(key):
    """Deterministic init mimicking nn.Linear default (uniform(+-1/sqrt(fan_in)))."""
    keys = jax.random.split(key, 6)

    def linear(kw, kb, fan_in, fan_out, pad_to=None):
        bound = 1.0 / jnp.sqrt(fan_in)
        # PyTorch stores W as (out, in); we store transposed (in, out) for x @ W.
        w = jax.random.uniform(kw, (fan_in, fan_out), jnp.float32, -bound, bound)
        b = jax.random.uniform(kb, (1, fan_out), jnp.float32, -bound, bound)
        if pad_to is not None and pad_to > fan_out:
            w = jnp.pad(w, ((0, 0), (0, pad_to - fan_out)))
            b = jnp.pad(b, ((0, 0), (0, pad_to - fan_out)))
        # Weights in bf16 for the MXU / halved HBM traffic; biases stay f32.
        return w.astype(jnp.bfloat16), b

    w1, b1 = linear(keys[0], keys[1], D_IN, D_H1)
    w2, b2 = linear(keys[2], keys[3], D_H1, D_H2)
    w3, b3 = linear(keys[4], keys[5], D_H2, D_OUT, pad_to=D_OUT_PAD)
    return (w1, b1, w2, b2, w3, b3)


def reference_forward(x, params):
    """Pure-JAX reference: f32 compute with the same bf16-quantized inputs/weights."""
    w1, b1, w2, b2, w3, b3 = params
    x = x.astype(jnp.float32)
    w1, w2, w3 = (w.astype(jnp.float32) for w in (w1, w2, w3))
    h = jnp.maximum(x @ w1 + b1, 0.0)
    h = jnp.maximum(h @ w2 + b2, 0.0)
    return (h @ w3 + b3)[:, :D_OUT]


if __name__ == "__main__":
    key = jax.random.PRNGKey(0)
    k_x, k_p = jax.random.split(key)

    B = 8  # small batch
    x = jax.random.normal(k_x, (B, D_IN), dtype=jnp.float32)
    params = init_params(k_p)

    # Producer-side bf16 activations (the kernel streams x as bf16 either way).
    x_bf16 = x.astype(jnp.bfloat16)

    out = c10_forward(x_bf16, params)
    out = jax.block_until_ready(out)

    ref = reference_forward(x_bf16, params)
    assert out.shape == (B, D_OUT)
    # bf16 matmul inputs and bf16 output (f32 accumulation) vs f32 reference.
    assert jnp.allclose(out, ref, atol=2e-2, rtol=2e-2)

    print("KERNEL_OK")
</pallas_src>

<mosaic_0001>
module attributes {stable_mosaic.version = 11 : i64} {
  func.func @mlp_kernel(%arg0: i32, %arg1: memref<16x2048xbf16, #tpu.memory_space<vmem>>, %arg2: memref<2048x512xbf16, #tpu.memory_space<vmem>>, %arg3: memref<1x512xf32, #tpu.memory_space<vmem>>, %arg4: memref<512x256xbf16, #tpu.memory_space<vmem>>, %arg5: memref<1x256xf32, #tpu.memory_space<vmem>>, %arg6: memref<256x128xbf16, #tpu.memory_space<vmem>>, %arg7: memref<1x128xf32, #tpu.memory_space<vmem>>, %arg8: memref<16x128xbf16, #tpu.memory_space<vmem>>) attributes {dimension_semantics = [#tpu.dimension_semantics<parallel>], iteration_bounds = array<i64: 1>, scalar_prefetch = 0 : i64, scratch_operands = 0 : i64, tpu.core_type = #tpu.core_type<tc>, window_params = [{transform_indices = @transform_0, window_bounds = array<i64: 16, 2048>}, {pipeline_mode = #tpu.pipeline_mode<synchronous>, transform_indices = @transform_1, window_bounds = array<i64: 2048, 512>}, {pipeline_mode = #tpu.pipeline_mode<synchronous>, transform_indices = @transform_2, window_bounds = array<i64: 1, 512>}, {pipeline_mode = #tpu.pipeline_mode<synchronous>, transform_indices = @transform_3, window_bounds = array<i64: 512, 256>}, {pipeline_mode = #tpu.pipeline_mode<synchronous>, transform_indices = @transform_4, window_bounds = array<i64: 1, 256>}, {pipeline_mode = #tpu.pipeline_mode<synchronous>, transform_indices = @transform_5, window_bounds = array<i64: 256, 128>}, {pipeline_mode = #tpu.pipeline_mode<synchronous>, transform_indices = @transform_6, window_bounds = array<i64: 1, 128>}, {transform_indices = @transform_7, window_bounds = array<i64: 16, 128>}]} {
    %c0 = arith.constant 0 : index
    %c0_0 = arith.constant 0 : index
    %0 = vector.load %arg1[%c0, %c0_0] : memref<16x2048xbf16, #tpu.memory_space<vmem>>, vector<16x2048xbf16>
    %c0_1 = arith.constant 0 : index
    %c0_2 = arith.constant 0 : index
    %1 = vector.load %arg2[%c0_1, %c0_2] : memref<2048x512xbf16, #tpu.memory_space<vmem>>, vector<2048x512xbf16>
    %cst = arith.constant dense<0.000000e+00> : vector<16x512xf32>
    %2 = tpu.matmul %0, %1, %cst {dimension_numbers = #tpu.dot_dimension_numbers<[1], [0], [0], [1], [0, 0, 1, 1], [], []>} : vector<16x2048xbf16>, vector<2048x512xbf16>, vector<16x512xf32> -> vector<16x512xf32>
    %c0_3 = arith.constant 0 : index
    %c0_4 = arith.constant 0 : index
    %3 = vector.load %arg3[%c0_3, %c0_4] : memref<1x512xf32, #tpu.memory_space<vmem>>, vector<1x512xf32>
    %4 = vector.broadcast %3 : vector<1x512xf32> to vector<16x512xf32>
    %5 = arith.addf %2, %4 : vector<16x512xf32>
    %cst_5 = arith.constant 0.000000e+00 : f32
    %6 = vector.broadcast %cst_5 : f32 to vector<16x512xf32>
    %7 = arith.maximumf %5, %6 : vector<16x512xf32>
    %8 = arith.truncf %7 : vector<16x512xf32> to vector<16x512xbf16>
    %c0_6 = arith.constant 0 : index
    %c0_7 = arith.constant 0 : index
    %9 = vector.load %arg4[%c0_6, %c0_7] : memref<512x256xbf16, #tpu.memory_space<vmem>>, vector<512x256xbf16>
    %cst_8 = arith.constant dense<0.000000e+00> : vector<16x256xf32>
    %10 = tpu.matmul %8, %9, %cst_8 {dimension_numbers = #tpu.dot_dimension_numbers<[1], [0], [0], [1], [0, 0, 1, 1], [], []>} : vector<16x512xbf16>, vector<512x256xbf16>, vector<16x256xf32> -> vector<16x256xf32>
    %c0_9 = arith.constant 0 : index
    %c0_10 = arith.constant 0 : index
    %11 = vector.load %arg5[%c0_9, %c0_10] : memref<1x256xf32, #tpu.memory_space<vmem>>, vector<1x256xf32>
    %12 = vector.broadcast %11 : vector<1x256xf32> to vector<16x256xf32>
    %13 = arith.addf %10, %12 : vector<16x256xf32>
    %cst_11 = arith.constant 0.000000e+00 : f32
    %14 = vector.broadcast %cst_11 : f32 to vector<16x256xf32>
    %15 = arith.maximumf %13, %14 : vector<16x256xf32>
    %16 = arith.truncf %15 : vector<16x256xf32> to vector<16x256xbf16>
    %c0_12 = arith.constant 0 : index
    %c0_13 = arith.constant 0 : index
    %17 = vector.load %arg6[%c0_12, %c0_13] : memref<256x128xbf16, #tpu.memory_space<vmem>>, vector<256x128xbf16>
    %cst_14 = arith.constant dense<0.000000e+00> : vector<16x128xf32>
    %18 = tpu.matmul %16, %17, %cst_14 {dimension_numbers = #tpu.dot_dimension_numbers<[1], [0], [0], [1], [0, 0, 1, 1], [], []>} : vector<16x256xbf16>, vector<256x128xbf16>, vector<16x128xf32> -> vector<16x128xf32>
    %c0_15 = arith.constant 0 : index
    %c0_16 = arith.constant 0 : index
    %19 = vector.load %arg7[%c0_15, %c0_16] : memref<1x128xf32, #tpu.memory_space<vmem>>, vector<1x128xf32>
    %20 = vector.broadcast %19 : vector<1x128xf32> to vector<16x128xf32>
    %21 = arith.addf %18, %20 : vector<16x128xf32>
    %22 = arith.truncf %21 : vector<16x128xf32> to vector<16x128xbf16>
    %c0_17 = arith.constant 0 : index
    %c0_18 = arith.constant 0 : index
    %23 = vector.load %arg8[%c0_17, %c0_18] : memref<16x128xbf16, #tpu.memory_space<vmem>>, vector<16x128xbf16>
    tpu.vector_store %arg8[%c0_17, %c0_18], %22 {strides = array<i32>} : memref<16x128xbf16, #tpu.memory_space<vmem>>, vector<16x128xbf16>,
    return
  }
  func.func @transform_0(%arg0: i32) -> (i32, i32) {
    %c0_i32 = arith.constant 0 : i32
    %c0_i32_0 = arith.constant 0 : i32
    return %arg0, %c0_i32 : i32, i32
  }
  func.func @transform_1(%arg0: i32) -> (i32, i32) {
    %c0_i32 = arith.constant 0 : i32
    %c0_i32_0 = arith.constant 0 : i32
    %c0_i32_1 = arith.constant 0 : i32
    return %c0_i32, %c0_i32_0 : i32, i32
  }
  func.func @transform_2(%arg0: i32) -> (i32, i32) {
    %c0_i32 = arith.constant 0 : i32
    %c0_i32_0 = arith.constant 0 : i32
    %c0_i32_1 = arith.constant 0 : i32
    return %c0_i32, %c0_i32_0 : i32, i32
  }
  func.func @transform_3(%arg0: i32) -> (i32, i32) {
    %c0_i32 = arith.constant 0 : i32
    %c0_i32_0 = arith.constant 0 : i32
    %c0_i32_1 = arith.constant 0 : i32
    return %c0_i32, %c0_i32_0 : i32, i32
  }
  func.func @transform_4(%arg0: i32) -> (i32, i32) {
    %c0_i32 = arith.constant 0 : i32
    %c0_i32_0 = arith.constant 0 : i32
    %c0_i32_1 = arith.constant 0 : i32
    return %c0_i32, %c0_i32_0 : i32, i32
  }
  func.func @transform_5(%arg0: i32) -> (i32, i32) {
    %c0_i32 = arith.constant 0 : i32
    %c0_i32_0 = arith.constant 0 : i32
    %c0_i32_1 = arith.constant 0 : i32
    return %c0_i32, %c0_i32_0 : i32, i32
  }
  func.func @transform_6(%arg0: i32) -> (i32, i32) {
    %c0_i32 = arith.constant 0 : i32
    %c0_i32_0 = arith.constant 0 : i32
    %c0_i32_1 = arith.constant 0 : i32
    return %c0_i32, %c0_i32_0 : i32, i32
  }
  func.func @transform_7(%arg0: i32) -> (i32, i32) {
    %c0_i32 = arith.constant 0 : i32
    %c0_i32_0 = arith.constant 0 : i32
    return %arg0, %c0_i32 : i32, i32
  }
}

</mosaic_0001>

<bundles_post_ra>
// kernel: tpu_custom_call.1
= control target key start
LH: loop header
LB: loop body
LE: loop exit
PB: predicated region body
PF: predicated region fallthrough
CT: control target
= control target key end

     0   :  { %12 = vsyncpa [#allocation3], 0  ;;  %s6792_s0 = inlined_call_operand.hbm [shape: bf16[16,2048], index: 0, kind: input, shape index: {}]   ;;  %s6793_s1 = inlined_call_operand.hbm [shape: bf16[2048,512], index: 1, kind: input, shape index: {}]   ;;  %s6794_s2 = inlined_call_operand.hbm [shape: f32[1,512], index: 2, kind: input, shape index: {}]   ;;  %s6795_s3 = inlined_call_operand.hbm [shape: bf16[512,256], index: 3, kind: input, shape index: {}]   ;;  %s6796_s4 = inlined_call_operand.hbm [shape: f32[1,256], index: 4, kind: input, shape index: {}]   ;;  %s6797_s5 = inlined_call_operand.hbm [shape: bf16[256,128], index: 5, kind: input, shape index: {}]   ;;  %s6798_s6 = inlined_call_operand.hbm [shape: f32[1,128], index: 6, kind: input, shape index: {}]   ;;  %s6799_s7 = inlined_call_operand.hbm [shape: bf16[16,128], index: 7, kind: output, shape index: {}]  }
   0x1   :  { %13 = vsyncpa [#allocation6], 0 }
   0x2   :  { %14 = vsyncpa [#allocation9], 0 }
   0x3   :  { %15 = vsyncpa [#allocation12], 0 }
   0x4   :  { %16 = vsyncpa [#allocation4], 0  ;;  %s6494_s24 = smov [#allocation5]   ;;  %s6308_s28 = scalar_lea.hbm %s6793_s1, 65536 }
   0x5   :  { %s34_s25 = sshll.u32 %s6494_s24, 4  ;;  %p6309_p0 = scmp.ne.s32.totalorder %s6793_s1, %s6308_s28  ;;  %s35_s25 = int_to_ptr.vmem [resolvable:$true] %s34_s25 }
   0x6   :  { %p6312_p1 = scmp.lt.u32.totalorder %s6308_s28, %s6793_s1 }
   0x8   :  { %p6314_p2 = pnand %p6312_p1, %p6309_p0 }
   0xa   :  { %6317 = shalt.err (!%p6314_p2)
}
   0xb   :  { %s6318_s10 = scalar_lea.vmem %s35_s25, 65536  ;;  %p6323_p4 = scmp.lt.s32.totalorder %s35_s25, %s35_s25 }
   0xc   :  { %p6319_p3 = scmp.ne.s32.totalorder %s35_s25, %s6318_s10  ;;  %p6324_p5 = scmp.lt.s32.totalorder %s6318_s10, %s6318_s10 }
   0xe   :  { %p6325_p6 = por %p6324_p5, %p6323_p4 }
  0x10   :  { %p6326_p7 = pnand %p6325_p6, %p6319_p3 }
  0x12   :  { %6329 = shalt.err (!%p6326_p7)
}
  0x13   :  { %s6495_s11 = smov 256   ;;  %s6496_s12 = smov 16  }
  0x14   :  { %40 = dma.hbm_to_vmem [thread:$0]  %s6793_s1, 65536, %s35_s25, [#allocation6], %s6495_s11, %s6495_s11, %s6496_s12  }
  0x15   :  { %s6497_s15 = smov [#allocation8]   ;;  %s6330_s19 = scalar_lea.hbm %s6795_s3, 8192 }
  0x16   :  { %s56_s16 = sshll.u32 %s6497_s15, 4  ;;  %p6331_p8 = scmp.ne.s32.totalorder %s6795_s3, %s6330_s19  ;;  %s57_s16 = int_to_ptr.vmem [resolvable:$true] %s56_s16 }
  0x17   :  { %p6334_p9 = scmp.lt.u32.totalorder %s6330_s19, %s6795_s3 }
  0x19   :  { %p6336_p10 = pnand %p6334_p9, %p6331_p8 }
  0x1b   :  { %6339 = shalt.err (!%p6336_p10)
}
  0x1c   :  { %s6340_s24 = scalar_lea.vmem %s57_s16, 8192  ;;  %p6345_p12 = scmp.lt.s32.totalorder %s57_s16, %s57_s16 }
  0x1d   :  { %p6341_p11 = scmp.ne.s32.totalorder %s57_s16, %s6340_s24  ;;  %p6346_p13 = scmp.lt.s32.totalorder %s6340_s24, %s6340_s24 }
  0x1f   :  { %p6347_p0 = por %p6346_p13, %p6345_p12 }
  0x21   :  { %p6348_p1 = pnand %p6347_p0, %p6341_p11 }
  0x23   :  { %6351 = shalt.err (!%p6348_p1)
}
  0x24   :  { %s6498_s1 = smov 128   ;;  %s6499_s25 = smov 8  }
  0x25   :  { %62 = dma.hbm_to_vmem [thread:$0]  %s6795_s3, 8192, %s57_s16, [#allocation9], %s6498_s1, %s6498_s1, %s6499_s25  }
  0x26   :  { %s6500_s28 = smov [#allocation11]   ;;  %s6352_s9 = scalar_lea.hbm %s6797_s5, 2048 }
  0x27   :  { %s78_s29 = sshll.u32 %s6500_s28, 4  ;;  %p6353_p2 = scmp.ne.s32.totalorder %s6797_s5, %s6352_s9  ;;  %s79_s29 = int_to_ptr.vmem [resolvable:$true] %s78_s29 }
  0x28   :  { %p6356_p3 = scmp.lt.u32.totalorder %s6352_s9, %s6797_s5 }
  0x2a   :  { %p6358_p4 = pnand %p6356_p3, %p6353_p2 }
  0x2c   :  { %6361 = shalt.err (!%p6358_p4)
}
  0x2d   :  { %s6362_s14 = scalar_lea.vmem %s79_s29, 2048  ;;  %p6367_p6 = scmp.lt.s32.totalorder %s79_s29, %s79_s29 }
  0x2e   :  { %p6363_p5 = scmp.ne.s32.totalorder %s79_s29, %s6362_s14  ;;  %p6368_p7 = scmp.lt.s32.totalorder %s6362_s14, %s6362_s14 }
  0x30   :  { %p6369_p8 = por %p6368_p7, %p6367_p6 }
  0x32   :  { %p6370_p9 = pnand %p6369_p8, %p6363_p5 }
  0x34   :  { %6373 = shalt.err (!%p6370_p9)
}
  0x35   :  { %s6501_s3 = smov 64   ;;  %s6502_s15 = smov 4  }
  0x36   :  { %84 = dma.hbm_to_vmem [thread:$0]  %s6797_s5, 2048, %s79_s29, [#allocation12], %s6501_s3, %s6501_s3, %s6502_s15  }
  0x37   :  { %s6503_s18 = smov [#allocation2]   ;;  %s6374_s22 = scalar_lea.hbm %s6792_s0, 2048 }
  0x38   :  { %s22_s19 = sshll.u32 %s6503_s18, 4  ;;  %p6375_p10 = scmp.ne.s32.totalorder %s6792_s0, %s6374_s22  ;;  %s23_s19 = int_to_ptr.vmem [resolvable:$true] %s22_s19 }
  0x39   :  { %p6378_p11 = scmp.lt.u32.totalorder %s6374_s22, %s6792_s0 }
  0x3b   :  { %p6380_p12 = pnand %p6378_p11, %p6375_p10 }
  0x3d   :  { %6383 = shalt.err (!%p6380_p12)
}
  0x3e   :  { %s6384_s26 = scalar_lea.vmem %s23_s19, 2048  ;;  %p6389_p0 = scmp.lt.s32.totalorder %s23_s19, %s23_s19 }
  0x3f   :  { %p6385_p13 = scmp.ne.s32.totalorder %s23_s19, %s6384_s26  ;;  %p6390_p1 = scmp.lt.s32.totalorder %s6384_s26, %s6384_s26 }
  0x41   :  { %p6391_p2 = por %p6390_p1, %p6389_p0 }
  0x43   :  { %p6392_p3 = pnand %p6391_p2, %p6385_p13 }
  0x45   :  { %6395 = shalt.err (!%p6392_p3)
}
  0x46   :  { %s6504_s5 = smov 1024   ;;  %s6505_s29 = smov [#allocation7]  }
  0x47   :  { %28 = dma.hbm_to_vmem [thread:$0]  %s6792_s0, 2048, %s23_s19, [#allocation3], %s6504_s5, %s6504_s5, %s6501_s3  }
  0x48   :  { %s47_s30 = sshll.u32 %s6505_s29, 4  ;;  %s6506_s8 = smov [#allocation10]   ;;  %s48_s30 = int_to_ptr.vmem [resolvable:$true] %s47_s30 }
  0x49   :  { %s69_s9 = sshll.u32 %s6506_s8, 4  ;;  %s6396_s12 = scalar_lea.hbm %s6794_s2, 64  ;;  %s70_s9 = int_to_ptr.vmem [resolvable:$true] %s69_s9 }
  0x4a   :  { %p6397_p4 = scmp.ne.s32.totalorder %s6794_s2, %s6396_s12  ;;  %p6400_p5 = scmp.lt.u32.totalorder %s6396_s12, %s6794_s2 }
  0x4c   :  { %p6402_p6 = pnand %p6400_p5, %p6397_p4 }
  0x4e   :  { %6405 = shalt.err (!%p6402_p6)
}
  0x4f   :  { %s6406_s0 = scalar_lea.vmem %s48_s30, 64  ;;  %p6411_p8 = scmp.lt.s32.totalorder %s48_s30, %s48_s30 }
  0x50   :  { %p6407_p7 = scmp.ne.s32.totalorder %s48_s30, %s6406_s0  ;;  %p6412_p9 = scmp.lt.s32.totalorder %s6406_s0, %s6406_s0 }
  0x52   :  { %p6413_p10 = por %p6412_p9, %p6411_p8 }
  0x54   :  { %p6414_p11 = pnand %p6413_p10, %p6407_p7 }
  0x56   :  { %6417 = shalt.err (!%p6414_p11)
}
  0x57   :  { %50 = dma.hbm_to_vmem [thread:$0]  %s6794_s2, 64, %s48_s30, [#allocation6]  }
  0x58   :  { %s6418_s22 = scalar_lea.hbm %s6796_s4, 32 }
  0x59   :  { %p6419_p12 = scmp.ne.s32.totalorder %s6796_s4, %s6418_s22  ;;  %p6422_p13 = scmp.lt.u32.totalorder %s6418_s22, %s6796_s4 }
  0x5b   :  { %p6424_p0 = pnand %p6422_p13, %p6419_p12 }
  0x5d   :  { %6427 = shalt.err (!%p6424_p0)
}
  0x5e   :  { %s6428_s26 = scalar_lea.vmem %s70_s9, 32  ;;  %p6433_p2 = scmp.lt.s32.totalorder %s70_s9, %s70_s9 }
  0x5f   :  { %p6429_p1 = scmp.ne.s32.totalorder %s70_s9, %s6428_s26  ;;  %p6434_p3 = scmp.lt.s32.totalorder %s6428_s26, %s6428_s26 }
  0x61   :  { %p6435_p4 = por %p6434_p3, %p6433_p2 }
  0x63   :  { %p6436_p5 = pnand %p6435_p4, %p6429_p1 }
  0x65   :  { %6439 = shalt.err (!%p6436_p5)
}
  0x66   :  { %72 = dma.hbm_to_vmem [thread:$0]  %s6796_s4, 32, %s70_s9, [#allocation9]  }
  0x67   :  { %s6507_s27 = smov [#allocation13]   ;;  %s6440_s8 = scalar_lea.hbm %s6798_s6, 16 }
  0x68   :  { %s91_s28 = sshll.u32 %s6507_s27, 4  ;;  %p6441_p6 = scmp.ne.s32.totalorder %s6798_s6, %s6440_s8  ;;  %s92_s28 = int_to_ptr.vmem [resolvable:$true] %s91_s28 }
  0x69   :  { %p6444_p7 = scmp.lt.u32.totalorder %s6440_s8, %s6798_s6 }
  0x6b   :  { %p6446_p8 = pnand %p6444_p7, %p6441_p6 }
  0x6d   :  { %6449 = shalt.err (!%p6446_p8)
}
  0x6e   :  { %s6450_s14 = scalar_lea.vmem %s92_s28, 16  ;;  %s6454_s4 = scalar_lea.vmem %s92_s28, 32 }
  0x6f   :  { %p6451_p9 = scmp.ne.s32.totalorder %s92_s28, %s6450_s14  ;;  %p6455_p10 = scmp.lt.s32.totalorder %s92_s28, %s92_s28 }
  0x70   :  { %p6456_p11 = scmp.lt.s32.totalorder %s6454_s4, %s6450_s14 }
  0x72   :  { %p6457_p12 = por %p6456_p11, %p6455_p10 }
  0x74   :  { %p6458_p13 = pnand %p6457_p12, %p6451_p9 }
  0x76   :  { %6461 = shalt.err (!%p6458_p13)
}
  0x77   :  { %94 = dma.hbm_to_vmem [thread:$0]  %s6798_s6, 16, %s92_s28, [#allocation12]  }
  0x78   :  { %6484 = dma.done.wait [#allocation3], 2048  }
  0x79   :  { %6485 = vsyncadd [#allocation3], 4294965248 }
  0x7a   :  { %6486 = dma.done.wait [#allocation6], 65600  }
  0x7b   :  { %6487 = vsyncadd [#allocation6], 4294901696 }
  0x7c   :  { %6488 = dma.done.wait [#allocation9], 8224  }
  0x7d   :  { %6489 = vsyncadd [#allocation9], 4294959072 }
  0x7e   :  { %6490 = dma.done.wait [#allocation12], 2064  }
  0x7f   :  { %6491 = vsyncadd [#allocation12], 4294965232  ;;  %v5428_v0 = vld [vmem:[#allocation5 + $0x4] ss:$16 sps:$4 sm:$0xff]   ;;  %v5432_v2 = vld [vmem:[#allocation5] ss:$16 sps:$4 sm:$0xff]  }
  0x80   :  { %v5430_v1 = vld [vmem:[#allocation5 + $0x204] ss:$16 sps:$4 sm:$0xff]   ;;  %3307 = vmatprep.subr.bf16.mxu1 %v5428_v0  ;;  %v5433_v3 = vld [vmem:[#allocation5 + $0x200] ss:$16 sps:$4 sm:$0xff]   ;;  %v118_v50 = vld [vmem:[#allocation2 + $0x8] sm:$0xff]  ;;  %s6508_s6 = smov [#allocation14]  }
  0x81   :  { %3350 = vmatprep.subr.bf16.mxu0 %v5430_v1  ;;  %v5434_v4 = vld [vmem:[#allocation5 + $0x24] ss:$16 sps:$4 sm:$0xff]   ;;  %3308 = vmatpush1.bf16.msra.mxu1 %v5432_v2  ;;  %v5438_v6 = vld [vmem:[#allocation5 + $0x20] ss:$16 sps:$4 sm:$0xff]   ;;  %v126_v51 = vld [vmem:[#allocation2 + $0x48] sm:$0xff]  ;;  %s4686_s17 = sshll.u32 %s6508_s6, 4  ;;  %s4687_s17 = int_to_ptr.vmem [resolvable:$true] %s4686_s17 }
  0x82   :  { %3351 = vmatpush1.bf16.msra.mxu0 %v5433_v3  ;;  %v5436_v5 = vld [vmem:[#allocation5 + $0x224] ss:$16 sps:$4 sm:$0xff]   ;;  %3309 = vmatprep.subr.bf16.mxu1 %v5434_v4  ;;  %v5439_v7 = vld [vmem:[#allocation5 + $0x220] ss:$16 sps:$4 sm:$0xff]   ;;  %v6637_v55 = vcombine.high %v118_v50, %v126_v51  ;;  %s6462_s0 = scalar_lea.vmem %s4687_s17, 128  ;;  %p6467_p1 = scmp.lt.s32.totalorder %s4687_s17, %s4687_s17 }
  0x83   :  { %3352 = vmatprep.subr.bf16.mxu0 %v5436_v5  ;;  %v5440_v8 = vld [vmem:[#allocation5 + $0x44] ss:$16 sps:$4 sm:$0xff]   ;;  %v5444_v10 = vld [vmem:[#allocation5 + $0x40] ss:$16 sps:$4 sm:$0xff]   ;;  %p6463_p0 = scmp.ne.s32.totalorder %s4687_s17, %s6462_s0  ;;  %p6468_p2 = scmp.lt.s32.totalorder %s6462_s0, %s6462_s0 }
  0x84   :  { %v5442_v9 = vld [vmem:[#allocation5 + $0x244] ss:$16 sps:$4 sm:$0xff]   ;;  %v5445_v11 = vld [vmem:[#allocation5 + $0x240] ss:$16 sps:$4 sm:$0xff]   ;;  %3382 = vmatprep.mubr.bf16.mxu0 %v6637_v55 }
  0x85   :  { %3310 = vmatpush1.bf16.msra.mxu1 %v5438_v6  ;;  %v5446_v12 = vld [vmem:[#allocation5 + $0x64] ss:$16 sps:$4 sm:$0xff]   ;;  %v5450_v14 = vld [vmem:[#allocation5 + $0x60] ss:$16 sps:$4 sm:$0xff]   ;;  %p6469_p3 = por %p6468_p2, %p6467_p1 }
  0x86   :  { %3353 = vmatpush1.bf16.msra.mxu0 %v5439_v7  ;;  %3311 = vmatprep.subr.bf16.mxu1 %v5440_v8  ;;  %v5448_v13 = vld [vmem:[#allocation5 + $0x264] ss:$16 sps:$4 sm:$0xff]   ;;  %v5451_v15 = vld [vmem:[#allocation5 + $0x260] ss:$16 sps:$4 sm:$0xff]   ;;  %v5529_v7 = vld [vmem:[#allocation5 + $0xc] ss:$16 sps:$4 sm:$0xff]  }
  0x87   :  { %3354 = vmatprep.subr.bf16.mxu0 %v5442_v9  ;;  %v5452_v16 = vld [vmem:[#allocation5 + $0x84] ss:$16 sps:$4 sm:$0xff]   ;;  %v5456_v18 = vld [vmem:[#allocation5 + $0x80] ss:$16 sps:$4 sm:$0xff]   ;;  %v6642_v9 = vcombine.low %v118_v50, %v126_v51  ;;  %v5581_v50 = vld [vmem:[#allocation5 + $0x128] ss:$16 sps:$4 sm:$0xff]   ;;  %p6470_p4 = pnand %p6469_p3, %p6463_p0 }
  0x88   :  { %v5454_v17 = vld [vmem:[#allocation5 + $0x284] ss:$16 sps:$4 sm:$0xff]   ;;  %v5457_v19 = vld [vmem:[#allocation5 + $0x280] ss:$16 sps:$4 sm:$0xff]  }
  0x89   :  { %3312 = vmatpush1.bf16.msra.mxu1 %v5444_v10  ;;  %v5458_v20 = vld [vmem:[#allocation5 + $0xa4] ss:$16 sps:$4 sm:$0xff]   ;;  %v5462_v22 = vld [vmem:[#allocation5 + $0xa0] ss:$16 sps:$4 sm:$0xff]  }
  0x8a   :  { %3355 = vmatpush1.bf16.msra.mxu0 %v5445_v11  ;;  %3313 = vmatprep.subr.bf16.mxu1 %v5446_v12  ;;  %v5460_v21 = vld [vmem:[#allocation5 + $0x2a4] ss:$16 sps:$4 sm:$0xff]   ;;  %v5463_v23 = vld [vmem:[#allocation5 + $0x2a0] ss:$16 sps:$4 sm:$0xff]   ;;  %v5527_v11 = vld [vmem:[#allocation5 + $0x8] ss:$16 sps:$4 sm:$0xff]  }
  0x8b   :  { %3356 = vmatprep.subr.bf16.mxu0 %v5448_v13  ;;  %v5464_v24 = vld [vmem:[#allocation5 + $0xc4] ss:$16 sps:$4 sm:$0xff]   ;;  %v5468_v26 = vld [vmem:[#allocation5 + $0xc0] ss:$16 sps:$4 sm:$0xff]   ;;  %v5535_v13 = vld [vmem:[#allocation5 + $0x2c] ss:$16 sps:$4 sm:$0xff]  }
  0x8c   :  { %v5466_v25 = vld [vmem:[#allocation5 + $0x2c4] ss:$16 sps:$4 sm:$0xff]   ;;  %v5469_v27 = vld [vmem:[#allocation5 + $0x2c0] ss:$16 sps:$4 sm:$0xff]  }
  0x8d   :  { %3314 = vmatpush1.bf16.msra.mxu1 %v5450_v14  ;;  %v5470_v28 = vld [vmem:[#allocation5 + $0xe4] ss:$16 sps:$4 sm:$0xff]   ;;  %v5474_v30 = vld [vmem:[#allocation5 + $0xe0] ss:$16 sps:$4 sm:$0xff]  }
  0x8e   :  { %3357 = vmatpush1.bf16.msra.mxu0 %v5451_v15  ;;  %3315 = vmatprep.subr.bf16.mxu1 %v5452_v16  ;;  %v5472_v29 = vld [vmem:[#allocation5 + $0x2e4] ss:$16 sps:$4 sm:$0xff]   ;;  %v5475_v31 = vld [vmem:[#allocation5 + $0x2e0] ss:$16 sps:$4 sm:$0xff]   ;;  %v5533_v15 = vld [vmem:[#allocation5 + $0x28] ss:$16 sps:$4 sm:$0xff]  }
  0x8f   :  { %3358 = vmatprep.subr.bf16.mxu0 %v5454_v17  ;;  %v5476_v32 = vld [vmem:[#allocation5 + $0x104] ss:$16 sps:$4 sm:$0xff]   ;;  %v5480_v34 = vld [vmem:[#allocation5 + $0x100] ss:$16 sps:$4 sm:$0xff]   ;;  %v5541_v17 = vld [vmem:[#allocation5 + $0x4c] ss:$16 sps:$4 sm:$0xff]  }
  0x90   :  { %v5478_v33 = vld [vmem:[#allocation5 + $0x304] ss:$16 sps:$4 sm:$0xff]   ;;  %v5481_v35 = vld [vmem:[#allocation5 + $0x300] ss:$16 sps:$4 sm:$0xff]  }
  0x91   :  { %3316 = vmatpush1.bf16.msra.mxu1 %v5456_v18  ;;  %v5482_v36 = vld [vmem:[#allocation5 + $0x124] ss:$16 sps:$4 sm:$0xff]   ;;  %v5486_v38 = vld [vmem:[#allocation5 + $0x120] ss:$16 sps:$4 sm:$0xff]  }
  0x92   :  { %3359 = vmatpush1.bf16.msra.mxu0 %v5457_v19  ;;  %3317 = vmatprep.subr.bf16.mxu1 %v5458_v20  ;;  %v5484_v37 = vld [vmem:[#allocation5 + $0x324] ss:$16 sps:$4 sm:$0xff]   ;;  %v5487_v39 = vld [vmem:[#allocation5 + $0x320] ss:$16 sps:$4 sm:$0xff]   ;;  %v5539_v19 = vld [vmem:[#allocation5 + $0x48] ss:$16 sps:$4 sm:$0xff]  }
  0x93   :  { %3360 = vmatprep.subr.bf16.mxu0 %v5460_v21  ;;  %v5488_v40 = vld [vmem:[#allocation5 + $0x144] ss:$16 sps:$4 sm:$0xff]   ;;  %v5492_v42 = vld [vmem:[#allocation5 + $0x140] ss:$16 sps:$4 sm:$0xff]   ;;  %v5547_v21 = vld [vmem:[#allocation5 + $0x6c] ss:$16 sps:$4 sm:$0xff]  }
  0x94   :  { %v5490_v41 = vld [vmem:[#allocation5 + $0x344] ss:$16 sps:$4 sm:$0xff]   ;;  %v5493_v43 = vld [vmem:[#allocation5 + $0x340] ss:$16 sps:$4 sm:$0xff]  }
  0x95   :  { %3318 = vmatpush1.bf16.msra.mxu1 %v5462_v22  ;;  %v5494_v44 = vld [vmem:[#allocation5 + $0x164] ss:$16 sps:$4 sm:$0xff]   ;;  %v5498_v46 = vld [vmem:[#allocation5 + $0x160] ss:$16 sps:$4 sm:$0xff]  }
  0x96   :  { %3361 = vmatpush1.bf16.msra.mxu0 %v5463_v23  ;;  %3319 = vmatprep.subr.bf16.mxu1 %v5464_v24  ;;  %v5496_v45 = vld [vmem:[#allocation5 + $0x364] ss:$16 sps:$4 sm:$0xff]   ;;  %v5499_v47 = vld [vmem:[#allocation5 + $0x360] ss:$16 sps:$4 sm:$0xff]   ;;  %v5545_v23 = vld [vmem:[#allocation5 + $0x68] ss:$16 sps:$4 sm:$0xff]  }
  0x97   :  { %3362 = vmatprep.subr.bf16.mxu0 %v5466_v25  ;;  %v117_v48 = vld [vmem:[#allocation2] sm:$0xff]  ;;  %v5553_v25 = vld [vmem:[#allocation5 + $0x8c] ss:$16 sps:$4 sm:$0xff]  }
  0x98   :  { %v125_v49 = vld [vmem:[#allocation2 + $0x40] sm:$0xff] }
  0x99   :  { %3320 = vmatpush1.bf16.msra.mxu1 %v5468_v26  ;;  %v5500_v52 = vld [vmem:[#allocation5 + $0x184] ss:$16 sps:$4 sm:$0xff]   ;;  %v4702_v53 = vcombine.high %v117_v48, %v125_v49  ;;  %v5504_v56 = vld [vmem:[#allocation5 + $0x180] ss:$16 sps:$4 sm:$0xff]   ;;  %v6640_v8 = vcombine.low %v117_v48, %v125_v49  ;;  %v5583_v48 = vld [vmem:[#allocation5 + $0x12c] ss:$16 sps:$4 sm:$0xff]  }
  0x9a   :  { %3363 = vmatpush1.bf16.msra.mxu0 %v5469_v27  ;;  %3321 = vmatprep.subr.bf16.mxu1 %v5470_v28  ;;  %v5502_v54 = vld [vmem:[#allocation5 + $0x384] ss:$16 sps:$4 sm:$0xff]   ;;  %v5505_v57 = vld [vmem:[#allocation5 + $0x380] ss:$16 sps:$4 sm:$0xff]   ;;  %v5551_v27 = vld [vmem:[#allocation5 + $0x88] ss:$16 sps:$4 sm:$0xff]  }
  0x9b   :  { %3364 = vmatprep.subr.bf16.mxu0 %v5472_v29  ;;  %3339 = vmatprep.mubr.bf16.mxu1 %v4702_v53  ;;  %v5506_v58 = vld [vmem:[#allocation5 + $0x1a4] ss:$16 sps:$4 sm:$0xff]   ;;  %v5510_v60 = vld [vmem:[#allocation5 + $0x1a0] ss:$16 sps:$4 sm:$0xff]   ;;  %v5559_v29 = vld [vmem:[#allocation5 + $0xac] ss:$16 sps:$4 sm:$0xff]  }
  0x9c   :  { %v5508_v59 = vld [vmem:[#allocation5 + $0x3a4] ss:$16 sps:$4 sm:$0xff]   ;;  %v5511_v61 = vld [vmem:[#allocation5 + $0x3a0] ss:$16 sps:$4 sm:$0xff]  }
  0x9d   :  { %3322 = vmatpush1.bf16.msra.mxu1 %v5474_v30  ;;  %v5512_v62 = vld [vmem:[#allocation5 + $0x1c4] ss:$16 sps:$4 sm:$0xff]   ;;  %v5516_v0 = vld [vmem:[#allocation5 + $0x1c0] ss:$16 sps:$4 sm:$0xff]  }
  0x9e   :  { %3365 = vmatpush1.bf16.msra.mxu0 %v5475_v31  ;;  %3323 = vmatprep.subr.bf16.mxu1 %v5476_v32  ;;  %v5514_v63 = vld [vmem:[#allocation5 + $0x3c4] ss:$16 sps:$4 sm:$0xff]   ;;  %v5517_v1 = vld [vmem:[#allocation5 + $0x3c0] ss:$16 sps:$4 sm:$0xff]   ;;  %v5557_v31 = vld [vmem:[#allocation5 + $0xa8] ss:$16 sps:$4 sm:$0xff]  }
  0x9f   :  { %3366 = vmatprep.subr.bf16.mxu0 %v5478_v33  ;;  %v5518_v2 = vld [vmem:[#allocation5 + $0x1e4] ss:$16 sps:$4 sm:$0xff]   ;;  %v5522_v4 = vld [vmem:[#allocation5 + $0x1e0] ss:$16 sps:$4 sm:$0xff]   ;;  %v5565_v33 = vld [vmem:[#allocation5 + $0xcc] ss:$16 sps:$4 sm:$0xff]  }
  0xa0   :  { %v5520_v3 = vld [vmem:[#allocation5 + $0x3e4] ss:$16 sps:$4 sm:$0xff]   ;;  %v5523_v5 = vld [vmem:[#allocation5 + $0x3e0] ss:$16 sps:$4 sm:$0xff]  }
  0xa1   :  { %3324 = vmatpush1.bf16.msra.mxu1 %v5480_v34  ;;  %v5526_v6 = vld [vmem:[#allocation5 + $0x404] ss:$16 sps:$4 sm:$0xff]   ;;  %v5524_v10 = vld [vmem:[#allocation5 + $0x400] ss:$16 sps:$4 sm:$0xff]  }
  0xa2   :  { %3367 = vmatpush1.bf16.msra.mxu0 %v5481_v35  ;;  %3325 = vmatprep.subr.bf16.mxu1 %v5482_v36  ;;  %v5532_v12 = vld [vmem:[#allocation5 + $0x424] ss:$16 sps:$4 sm:$0xff]   ;;  %v5530_v14 = vld [vmem:[#allocation5 + $0x420] ss:$16 sps:$4 sm:$0xff]  }
  0xa3   :  { %3368 = vmatprep.subr.bf16.mxu0 %v5484_v37  ;;  %v5538_v16 = vld [vmem:[#allocation5 + $0x444] ss:$16 sps:$4 sm:$0xff]   ;;  %v5536_v18 = vld [vmem:[#allocation5 + $0x440] ss:$16 sps:$4 sm:$0xff]   ;;  %v5563_v37 = vld [vmem:[#allocation5 + $0xc8] ss:$16 sps:$4 sm:$0xff]  }
  0xa4   :  { %v5544_v20 = vld [vmem:[#allocation5 + $0x464] ss:$16 sps:$4 sm:$0xff]   ;;  %v5542_v22 = vld [vmem:[#allocation5 + $0x460] ss:$16 sps:$4 sm:$0xff]  }
  0xa5   :  { %3326 = vmatpush1.bf16.msra.mxu1 %v5486_v38  ;;  %v5550_v24 = vld [vmem:[#allocation5 + $0x484] ss:$16 sps:$4 sm:$0xff]   ;;  %v5548_v26 = vld [vmem:[#allocation5 + $0x480] ss:$16 sps:$4 sm:$0xff]  }
  0xa6   :  { %3369 = vmatpush1.bf16.msra.mxu0 %v5487_v39  ;;  %3327 = vmatprep.subr.bf16.mxu1 %v5488_v40  ;;  %v5556_v28 = vld [vmem:[#allocation5 + $0x4a4] ss:$16 sps:$4 sm:$0xff]   ;;  %v5554_v30 = vld [vmem:[#allocation5 + $0x4a0] ss:$16 sps:$4 sm:$0xff]   ;;  %v5571_v40 = vld [vmem:[#allocation5 + $0xec] ss:$16 sps:$4 sm:$0xff]  }
  0xa7   :  { %3370 = vmatprep.subr.bf16.mxu0 %v5490_v41  ;;  %v5562_v32 = vld [vmem:[#allocation5 + $0x4c4] ss:$16 sps:$4 sm:$0xff]   ;;  %v5560_v36 = vld [vmem:[#allocation5 + $0x4c0] ss:$16 sps:$4 sm:$0xff]  }
  0xa8   :  { %v6646_v34 = vld [vmem:[#allocation2 + $0x10] sm:$0xff] }
  0xa9   :  { %3328 = vmatpush1.bf16.msra.mxu1 %v5492_v42  ;;  %v6648_v35 = vld [vmem:[#allocation2 + $0x50] sm:$0xff]  ;;  %v5569_v42 = vld [vmem:[#allocation5 + $0xe8] ss:$16 sps:$4 sm:$0xff]  }
  0xaa   :  { %3371 = vmatpush1.bf16.msra.mxu0 %v5493_v43  ;;  %3329 = vmatprep.subr.bf16.mxu1 %v5494_v44  ;;  %v6652_v38 = vcombine.high %v6646_v34, %v6648_v35  ;;  %v5568_v39 = vld [vmem:[#allocation5 + $0x4e4] ss:$16 sps:$4 sm:$0xff]   ;;  %v5566_v41 = vld [vmem:[#allocation5 + $0x4e0] ss:$16 sps:$4 sm:$0xff]   ;;  %v5577_v44 = vld [vmem:[#allocation5 + $0x10c] ss:$16 sps:$4 sm:$0xff]  }
  0xab   :  { %3372 = vmatprep.subr.bf16.mxu0 %v5496_v45  ;;  %v5574_v43 = vld [vmem:[#allocation5 + $0x504] ss:$16 sps:$4 sm:$0xff]   ;;  %v5572_v45 = vld [vmem:[#allocation5 + $0x500] ss:$16 sps:$4 sm:$0xff]  }
  0xac   :  { %v5578_v49 = vld [vmem:[#allocation5 + $0x520] ss:$16 sps:$4 sm:$0xff]   ;;  %v5586_v51 = vld [vmem:[#allocation5 + $0x544] ss:$16 sps:$4 sm:$0xff]  }
  0xad   :  { %3330 = vmatpush1.bf16.msra.mxu1 %v5498_v46  ;;  %v5575_v46 = vld [vmem:[#allocation5 + $0x108] ss:$16 sps:$4 sm:$0xff]  }
  0xae   :  { %3373 = vmatpush1.bf16.msra.mxu0 %v5499_v47  ;;  %3331 = vmatprep.subr.bf16.mxu1 %v5500_v52  ;;  %v5580_v47 = vld [vmem:[#allocation5 + $0x524] ss:$16 sps:$4 sm:$0xff]   ;;  %v5589_v52 = vld [vmem:[#allocation5 + $0x14c] ss:$16 sps:$4 sm:$0xff]  }
  0xaf   :  { %3374 = vmatprep.subr.bf16.mxu0 %v5502_v54  ;;  %v5587_v54 = vld [vmem:[#allocation5 + $0x148] ss:$16 sps:$4 sm:$0xff]  }
  0xb1   :  { %3332 = vmatpush1.bf16.msra.mxu1 %v5504_v56  ;;  %v5592_v56 = vld [vmem:[#allocation5 + $0x564] ss:$16 sps:$4 sm:$0xff]  }
  0xb2   :  { %3375 = vmatpush1.bf16.msra.mxu0 %v5505_v57  ;;  %3333 = vmatprep.subr.bf16.mxu1 %v5506_v58  ;;  %v5595_v57 = vld [vmem:[#allocation5 + $0x16c] ss:$16 sps:$4 sm:$0xff]   ;;  %v5590_v58 = vld [vmem:[#allocation5 + $0x560] ss:$16 sps:$4 sm:$0xff]  }
  0xb3   :  { %3376 = vmatprep.subr.bf16.mxu0 %v5508_v59  ;;  %v5593_v59 = vld [vmem:[#allocation5 + $0x168] ss:$16 sps:$4 sm:$0xff]  }
  0xb5   :  { %3334 = vmatpush1.bf16.msra.mxu1 %v5510_v60  ;;  %v5598_v60 = vld [vmem:[#allocation5 + $0x584] ss:$16 sps:$4 sm:$0xff]  }
  0xb6   :  { %3377 = vmatpush1.bf16.msra.mxu0 %v5511_v61  ;;  %3335 = vmatprep.subr.bf16.mxu1 %v5512_v62  ;;  %v5601_v61 = vld [vmem:[#allocation5 + $0x18c] ss:$16 sps:$4 sm:$0xff]   ;;  %v5596_v62 = vld [vmem:[#allocation5 + $0x580] ss:$16 sps:$4 sm:$0xff]  }
  0xb7   :  { %3378 = vmatprep.subr.bf16.mxu0 %v5514_v63  ;;  %v5599_v63 = vld [vmem:[#allocation5 + $0x188] ss:$16 sps:$4 sm:$0xff]  }
  0xb9   :  { %3336 = vmatpush1.bf16.msra.mxu1 %v5516_v0  ;;  %v5604_v0 = vld [vmem:[#allocation5 + $0x5a4] ss:$16 sps:$4 sm:$0xff]  }
  0xba   :  { %3379 = vmatpush1.bf16.msra.mxu0 %v5517_v1  ;;  %3337 = vmatprep.subr.bf16.mxu1 %v5518_v2  ;;  %v5607_v1 = vld [vmem:[#allocation5 + $0x1ac] ss:$16 sps:$4 sm:$0xff]   ;;  %v5602_v2 = vld [vmem:[#allocation5 + $0x5a0] ss:$16 sps:$4 sm:$0xff]  }
  0xbb   :  { %3380 = vmatprep.subr.bf16.mxu0 %v5520_v3  ;;  %v5605_v3 = vld [vmem:[#allocation5 + $0x1a8] ss:$16 sps:$4 sm:$0xff]  }
  0xbd   :  { %3338 = vmatpush1.bf16.msra.mxu1 %v5522_v4  ;;  %v5610_v4 = vld [vmem:[#allocation5 + $0x5c4] ss:$16 sps:$4 sm:$0xff]  }
  0xbe   :  { %3381 = vmatpush1.bf16.msra.mxu0 %v5523_v5  ;;  %3651 = vmatprep.subr.bf16.mxu1 %v5529_v7  ;;  %v5613_v5 = vld [vmem:[#allocation5 + $0x1cc] ss:$16 sps:$4 sm:$0xff]   ;;  %v5611_v7 = vld [vmem:[#allocation5 + $0x1c8] ss:$16 sps:$4 sm:$0xff]  }
  0xbf   :  { %3393 = vmatprep.subr.bf16.mxu0 %v5526_v6  ;;  %v5608_v6 = vld [vmem:[#allocation5 + $0x5c0] ss:$16 sps:$4 sm:$0xff]  }
  0xc0   :  { %3340 = vmatmul.mubr.bf16.vlgmr.msra.gmra.mrb[0].mxu1 %v6640_v8 }
  0xc1   :  { %3383 = vmatmul.mubr.bf16.vlgmr.msra.gmra.mrb[0].mxu0 %v6642_v9  ;;  %3652 = vmatpush1.bf16.msra.mxu1 %v5527_v11  ;;  %v5619_v11 = vld [vmem:[#allocation5 + $0x1ec] ss:$16 sps:$4 sm:$0xff]  }
  0xc2   :  { %3394 = vmatpush1.bf16.msra.mxu0 %v5524_v10  ;;  %3653 = vmatprep.subr.bf16.mxu1 %v5535_v13  ;;  %v5616_v10 = vld [vmem:[#allocation5 + $0x5e4] ss:$16 sps:$4 sm:$0xff]   ;;  %v5617_v13 = vld [vmem:[#allocation5 + $0x1e8] ss:$16 sps:$4 sm:$0xff]  }
  0xc3   :  { %3395 = vmatprep.subr.bf16.mxu0 %v5532_v12  ;;  %3683 = vmatprep.mubr.bf16.mxu1 %v4702_v53  ;;  %v5584_v53 = vld [vmem:[#allocation5 + $0x540] ss:$16 sps:$4 sm:$0xff]  }
  0xc4   :  { %3425 = vmatprep.mubr.bf16.mxu0 %v6652_v38  ;;  %v5614_v12 = vld [vmem:[#allocation5 + $0x5e0] ss:$16 sps:$4 sm:$0xff]  }
  0xc5   :  { %3654 = vmatpush1.bf16.msra.mxu1 %v5533_v15  ;;  %v5625_v15 = vld [vmem:[#allocation5 + $0x20c] ss:$16 sps:$4 sm:$0xff]  }
  0xc6   :  { %3396 = vmatpush1.bf16.msra.mxu0 %v5530_v14  ;;  %3655 = vmatprep.subr.bf16.mxu1 %v5541_v17  ;;  %v5622_v14 = vld [vmem:[#allocation5 + $0x604] ss:$16 sps:$4 sm:$0xff]   ;;  %v5620_v17 = vld [vmem:[#allocation5 + $0x600] ss:$16 sps:$4 sm:$0xff]  }
  0xc7   :  { %3397 = vmatprep.subr.bf16.mxu0 %v5538_v16  ;;  %v6657_v16 = vcombine.low %v6646_v34, %v6648_v35  ;;  %v5649_v34 = vld [vmem:[#allocation5 + $0x28c] ss:$16 sps:$4 sm:$0xff]   ;;  %v5644_v35 = vld [vmem:[#allocation5 + $0x680] ss:$16 sps:$4 sm:$0xff]  }
  0xc9   :  { %3656 = vmatpush1.bf16.msra.mxu1 %v5539_v19  ;;  %v5628_v19 = vld [vmem:[#allocation5 + $0x624] ss:$16 sps:$4 sm:$0xff]  }
  0xca   :  { %3398 = vmatpush1.bf16.msra.mxu0 %v5536_v18  ;;  %3657 = vmatprep.subr.bf16.mxu1 %v5547_v21  ;;  %v5623_v18 = vld [vmem:[#allocation5 + $0x208] ss:$16 sps:$4 sm:$0xff]  }
  0xcb   :  { %3399 = vmatprep.subr.bf16.mxu0 %v5544_v20  ;;  %v5631_v20 = vld [vmem:[#allocation5 + $0x22c] ss:$16 sps:$4 sm:$0xff]  }
  0xcc   :  { %v6659_v21 = vld [vmem:[#allocation2 + $0x18] sm:$0xff] }
  0xcd   :  { %3658 = vmatpush1.bf16.msra.mxu1 %v5545_v23  ;;  %v5626_v23 = vld [vmem:[#allocation5 + $0x620] ss:$16 sps:$4 sm:$0xff]  }
  0xce   :  { %3400 = vmatpush1.bf16.msra.mxu0 %v5542_v22  ;;  %3659 = vmatprep.subr.bf16.mxu1 %v5553_v25  ;;  %v6661_v22 = vld [vmem:[#allocation2 + $0x58] sm:$0xff] }
  0xcf   :  { %3401 = vmatprep.subr.bf16.mxu0 %v5550_v24  ;;  %v5629_v24 = vld [vmem:[#allocation5 + $0x228] ss:$16 sps:$4 sm:$0xff]   ;;  %v6667_v25 = vcombine.high %v6659_v21, %v6661_v22 }
  0xd1   :  { %3660 = vmatpush1.bf16.msra.mxu1 %v5551_v27  ;;  %v5637_v27 = vld [vmem:[#allocation5 + $0x24c] ss:$16 sps:$4 sm:$0xff]  }
  0xd2   :  { %3402 = vmatpush1.bf16.msra.mxu0 %v5548_v26  ;;  %3661 = vmatprep.subr.bf16.mxu1 %v5559_v29  ;;  %v5634_v26 = vld [vmem:[#allocation5 + $0x644] ss:$16 sps:$4 sm:$0xff]   ;;  %v5635_v29 = vld [vmem:[#allocation5 + $0x248] ss:$16 sps:$4 sm:$0xff]  }
  0xd3   :  { %3403 = vmatprep.subr.bf16.mxu0 %v5556_v28  ;;  %v5632_v28 = vld [vmem:[#allocation5 + $0x640] ss:$16 sps:$4 sm:$0xff]  }
  0xd5   :  { %3662 = vmatpush1.bf16.msra.mxu1 %v5557_v31  ;;  %v5638_v31 = vld [vmem:[#allocation5 + $0x660] ss:$16 sps:$4 sm:$0xff]  }
  0xd6   :  { %3404 = vmatpush1.bf16.msra.mxu0 %v5554_v30  ;;  %3663 = vmatprep.subr.bf16.mxu1 %v5565_v33  ;;  %v5643_v30 = vld [vmem:[#allocation5 + $0x26c] ss:$16 sps:$4 sm:$0xff]   ;;  %v5646_v33 = vld [vmem:[#allocation5 + $0x684] ss:$16 sps:$4 sm:$0xff]  }
  0xd7   :  { %3405 = vmatprep.subr.bf16.mxu0 %v5562_v32  ;;  %v5641_v32 = vld [vmem:[#allocation5 + $0x268] ss:$16 sps:$4 sm:$0xff]  }
  0xd9   :  { %3664 = vmatpush1.bf16.msra.mxu1 %v5563_v37  ;;  %v5655_v37 = vld [vmem:[#allocation5 + $0x2ac] ss:$16 sps:$4 sm:$0xff]  }
  0xda   :  { %3406 = vmatpush1.bf16.msra.mxu0 %v5560_v36  ;;  %3665 = vmatprep.subr.bf16.mxu1 %v5571_v40  ;;  %v5647_v36 = vld [vmem:[#allocation5 + $0x288] ss:$16 sps:$4 sm:$0xff]  }
  0xdb   :  { %3407 = vmatprep.subr.bf16.mxu0 %v5568_v39  ;;  %v5650_v39 = vld [vmem:[#allocation5 + $0x6a0] ss:$16 sps:$4 sm:$0xff]   ;;  %v5653_v40 = vld [vmem:[#allocation5 + $0x2a8] ss:$16 sps:$4 sm:$0xff]  }
  0xdd   :  { %3666 = vmatpush1.bf16.msra.mxu1 %v5569_v42  ;;  %v5661_v42 = vld [vmem:[#allocation5 + $0x2cc] ss:$16 sps:$4 sm:$0xff]  }
  0xde   :  { %3408 = vmatpush1.bf16.msra.mxu0 %v5566_v41  ;;  %3667 = vmatprep.subr.bf16.mxu1 %v5577_v44  ;;  %v5658_v41 = vld [vmem:[#allocation5 + $0x6c4] ss:$16 sps:$4 sm:$0xff]   ;;  %v5659_v44 = vld [vmem:[#allocation5 + $0x2c8] ss:$16 sps:$4 sm:$0xff]  }
  0xdf   :  { %3409 = vmatprep.subr.bf16.mxu0 %v5574_v43  ;;  %v5656_v43 = vld [vmem:[#allocation5 + $0x6c0] ss:$16 sps:$4 sm:$0xff]  }
  0xe1   :  { %3668 = vmatpush1.bf16.msra.mxu1 %v5575_v46  ;;  %v5667_v46 = vld [vmem:[#allocation5 + $0x2ec] ss:$16 sps:$4 sm:$0xff]  }
  0xe2   :  { %3410 = vmatpush1.bf16.msra.mxu0 %v5572_v45  ;;  %3669 = vmatprep.subr.bf16.mxu1 %v5583_v48  ;;  %v5664_v45 = vld [vmem:[#allocation5 + $0x6e4] ss:$16 sps:$4 sm:$0xff]   ;;  %v5665_v48 = vld [vmem:[#allocation5 + $0x2e8] ss:$16 sps:$4 sm:$0xff]  }
  0xe3   :  { %3411 = vmatprep.subr.bf16.mxu0 %v5580_v47  ;;  %v5662_v47 = vld [vmem:[#allocation5 + $0x6e0] ss:$16 sps:$4 sm:$0xff]  }
  0xe5   :  { %3670 = vmatpush1.bf16.msra.mxu1 %v5581_v50  ;;  %v5673_v50 = vld [vmem:[#allocation5 + $0x30c] ss:$16 sps:$4 sm:$0xff]  }
  0xe6   :  { %3412 = vmatpush1.bf16.msra.mxu0 %v5578_v49  ;;  %3671 = vmatprep.subr.bf16.mxu1 %v5589_v52  ;;  %v5670_v49 = vld [vmem:[#allocation5 + $0x704] ss:$16 sps:$4 sm:$0xff]   ;;  %v5671_v52 = vld [vmem:[#allocation5 + $0x308] ss:$16 sps:$4 sm:$0xff]  }
  0xe7   :  { %3413 = vmatprep.subr.bf16.mxu0 %v5586_v51  ;;  %v5668_v51 = vld [vmem:[#allocation5 + $0x700] ss:$16 sps:$4 sm:$0xff]  }
  0xe9   :  { %3672 = vmatpush1.bf16.msra.mxu1 %v5587_v54  ;;  %v5679_v54 = vld [vmem:[#allocation5 + $0x32c] ss:$16 sps:$4 sm:$0xff]  }
  0xea   :  { %3414 = vmatpush1.bf16.msra.mxu0 %v5584_v53  ;;  %3673 = vmatprep.subr.bf16.mxu1 %v5595_v57  ;;  %v5676_v53 = vld [vmem:[#allocation5 + $0x724] ss:$16 sps:$4 sm:$0xff]   ;;  %v5677_v57 = vld [vmem:[#allocation5 + $0x328] ss:$16 sps:$4 sm:$0xff]  }
  0xeb   :  { %3415 = vmatprep.subr.bf16.mxu0 %v5592_v56  ;;  %v5674_v56 = vld [vmem:[#allocation5 + $0x720] ss:$16 sps:$4 sm:$0xff]  }
  0xed   :  { %3674 = vmatpush1.bf16.msra.mxu1 %v5593_v59  ;;  %v5685_v59 = vld [vmem:[#allocation5 + $0x34c] ss:$16 sps:$4 sm:$0xff]  }
  0xee   :  { %3416 = vmatpush1.bf16.msra.mxu0 %v5590_v58  ;;  %3675 = vmatprep.subr.bf16.mxu1 %v5601_v61  ;;  %v5682_v58 = vld [vmem:[#allocation5 + $0x744] ss:$16 sps:$4 sm:$0xff]   ;;  %v5683_v61 = vld [vmem:[#allocation5 + $0x348] ss:$16 sps:$4 sm:$0xff]  }
  0xef   :  { %3417 = vmatprep.subr.bf16.mxu0 %v5598_v60  ;;  %v5680_v60 = vld [vmem:[#allocation5 + $0x740] ss:$16 sps:$4 sm:$0xff]  }
  0xf1   :  { %3676 = vmatpush1.bf16.msra.mxu1 %v5599_v63  ;;  %v5691_v63 = vld [vmem:[#allocation5 + $0x36c] ss:$16 sps:$4 sm:$0xff]  }
  0xf2   :  { %3418 = vmatpush1.bf16.msra.mxu0 %v5596_v62  ;;  %3677 = vmatprep.subr.bf16.mxu1 %v5607_v1  ;;  %v5688_v62 = vld [vmem:[#allocation5 + $0x764] ss:$16 sps:$4 sm:$0xff]   ;;  %v5689_v1 = vld [vmem:[#allocation5 + $0x368] ss:$16 sps:$4 sm:$0xff]  }
  0xf3   :  { %3419 = vmatprep.subr.bf16.mxu0 %v5604_v0  ;;  %v5686_v0 = vld [vmem:[#allocation5 + $0x760] ss:$16 sps:$4 sm:$0xff]  }
  0xf5   :  { %3678 = vmatpush1.bf16.msra.mxu1 %v5605_v3  ;;  %v5697_v3 = vld [vmem:[#allocation5 + $0x38c] ss:$16 sps:$4 sm:$0xff]  }
  0xf6   :  { %3420 = vmatpush1.bf16.msra.mxu0 %v5602_v2  ;;  %3679 = vmatprep.subr.bf16.mxu1 %v5613_v5  ;;  %v5694_v2 = vld [vmem:[#allocation5 + $0x784] ss:$16 sps:$4 sm:$0xff]   ;;  %v5695_v5 = vld [vmem:[#allocation5 + $0x388] ss:$16 sps:$4 sm:$0xff]  }
  0xf7   :  { %3421 = vmatprep.subr.bf16.mxu0 %v5610_v4  ;;  %v5692_v4 = vld [vmem:[#allocation5 + $0x780] ss:$16 sps:$4 sm:$0xff]  }
  0xf9   :  { %3680 = vmatpush1.bf16.msra.mxu1 %v5611_v7  ;;  %v5703_v7 = vld [vmem:[#allocation5 + $0x3ac] ss:$16 sps:$4 sm:$0xff]  }
  0xfa   :  { %3422 = vmatpush1.bf16.msra.mxu0 %v5608_v6  ;;  %3681 = vmatprep.subr.bf16.mxu1 %v5619_v11  ;;  %v5700_v6 = vld [vmem:[#allocation5 + $0x7a4] ss:$16 sps:$4 sm:$0xff]   ;;  %v5701_v11 = vld [vmem:[#allocation5 + $0x3a8] ss:$16 sps:$4 sm:$0xff]  }
  0xfb   :  { %3423 = vmatprep.subr.bf16.mxu0 %v5616_v10  ;;  %v5698_v10 = vld [vmem:[#allocation5 + $0x7a0] ss:$16 sps:$4 sm:$0xff]  }
  0xfd   :  { %3682 = vmatpush1.bf16.msra.mxu1 %v5617_v13  ;;  %v5709_v13 = vld [vmem:[#allocation5 + $0x3cc] ss:$16 sps:$4 sm:$0xff]  }
  0xfe   :  { %3424 = vmatpush1.bf16.msra.mxu0 %v5614_v12  ;;  %3694 = vmatprep.subr.bf16.mxu1 %v5625_v15  ;;  %v5706_v12 = vld [vmem:[#allocation5 + $0x7c4] ss:$16 sps:$4 sm:$0xff]   ;;  %v5707_v15 = vld [vmem:[#allocation5 + $0x3c8] ss:$16 sps:$4 sm:$0xff]  }
  0xff   :  { %3436 = vmatprep.subr.bf16.mxu0 %v5622_v14  ;;  %v5704_v14 = vld [vmem:[#allocation5 + $0x7c0] ss:$16 sps:$4 sm:$0xff]  }
 0x100   :  { %3684 = vmatmul.mubr.bf16.vlgmr.msra.gmra.mrb[4].mxu1 %v6640_v8  ;;  %v5640_v8 = vld [vmem:[#allocation5 + $0x664] ss:$16 sps:$4 sm:$0xff]  }
 0x101   :  { %3426 = vmatmul.mubr.bf16.vlgmr.msra.gmra.mrb[0].mxu0 %v6657_v16  ;;  %3695 = vmatpush1.bf16.msra.mxu1 %v5623_v18  ;;  %v5715_v18 = vld [vmem:[#allocation5 + $0x3ec] ss:$16 sps:$4 sm:$0xff]  }
 0x102   :  { %3437 = vmatpush1.bf16.msra.mxu0 %v5620_v17  ;;  %3696 = vmatprep.subr.bf16.mxu1 %v5631_v20  ;;  %v5712_v17 = vld [vmem:[#allocation5 + $0x7e4] ss:$16 sps:$4 sm:$0xff]   ;;  %v5713_v20 = vld [vmem:[#allocation5 + $0x3e8] ss:$16 sps:$4 sm:$0xff]  }
 0x103   :  { %3438 = vmatprep.subr.bf16.mxu0 %v5628_v19  ;;  %3468 = vmatprep.mubr.bf16.mxu0 %v6667_v25  ;;  %v5710_v19 = vld [vmem:[#allocation5 + $0x7e0] ss:$16 sps:$4 sm:$0xff]  }
 0x104   :  { %3726 = vmatprep.mubr.bf16.mxu1 %v6637_v55  ;;  %v5652_v55 = vld [vmem:[#allocation5 + $0x6a4] ss:$16 sps:$4 sm:$0xff]  }
 0x105   :  { %3697 = vmatpush1.bf16.msra.mxu1 %v5629_v24  ;;  %v5721_v24 = vld [vmem:[#allocation5 + $0x40c] ss:$16 sps:$4 sm:$0xff]  }
 0x106   :  { %3439 = vmatpush1.bf16.msra.mxu0 %v5626_v23  ;;  %3698 = vmatprep.subr.bf16.mxu1 %v5637_v27  ;;  %v5718_v23 = vld [vmem:[#allocation5 + $0x804] ss:$16 sps:$4 sm:$0xff]   ;;  %v6673_v27 = vcombine.low %v6659_v21, %v6661_v22  ;;  %v5722_v21 = vld [vmem:[#allocation5 + $0x820] ss:$16 sps:$4 sm:$0xff]   ;;  %v5725_v22 = vld [vmem:[#allocation5 + $0x428] ss:$16 sps:$4 sm:$0xff]  }
 0x107   :  { %3440 = vmatprep.subr.bf16.mxu0 %v5634_v26  ;;  %v5716_v26 = vld [vmem:[#allocation5 + $0x800] ss:$16 sps:$4 sm:$0xff]  }
 0x109   :  { %3699 = vmatpush1.bf16.msra.mxu1 %v5635_v29  ;;  %v6677_v29 = vld [vmem:[#allocation2 + $0x60] sm:$0xff] }
 0x10a   :  { %3441 = vmatpush1.bf16.msra.mxu0 %v5632_v28  ;;  %3700 = vmatprep.subr.bf16.mxu1 %v5643_v30  ;;  %v6675_v28 = vld [vmem:[#allocation2 + $0x20] sm:$0xff] }
 0x10b   :  { %3442 = vmatprep.subr.bf16.mxu0 %v5640_v8  ;;  %v5719_v8 = vld [vmem:[#allocation5 + $0x408] ss:$16 sps:$4 sm:$0xff]   ;;  %v5724_v30 = vld [vmem:[#allocation5 + $0x824] ss:$16 sps:$4 sm:$0xff]  }
 0x10d   :  { %3701 = vmatpush1.bf16.msra.mxu1 %v5641_v32  ;;  %v6681_v32 = vcombine.high %v6675_v28, %v6677_v29 }
 0x10e   :  { %3443 = vmatpush1.bf16.msra.mxu0 %v5638_v31  ;;  %3702 = vmatprep.subr.bf16.mxu1 %v5649_v34  ;;  %v5727_v31 = vld [vmem:[#allocation5 + $0x42c] ss:$16 sps:$4 sm:$0xff]  }
 0x10f   :  { %3444 = vmatprep.subr.bf16.mxu0 %v5646_v33  ;;  %v5730_v33 = vld [vmem:[#allocation5 + $0x844] ss:$16 sps:$4 sm:$0xff]   ;;  %v5733_v34 = vld [vmem:[#allocation5 + $0x44c] ss:$16 sps:$4 sm:$0xff]  }
 0x111   :  { %3703 = vmatpush1.bf16.msra.mxu1 %v5647_v36  ;;  %v5731_v36 = vld [vmem:[#allocation5 + $0x448] ss:$16 sps:$4 sm:$0xff]  }
 0x112   :  { %3445 = vmatpush1.bf16.msra.mxu0 %v5644_v35  ;;  %3704 = vmatprep.subr.bf16.mxu1 %v5655_v37  ;;  %v5728_v35 = vld [vmem:[#allocation5 + $0x840] ss:$16 sps:$4 sm:$0xff]  }
 0x113   :  { %3446 = vmatprep.subr.bf16.mxu0 %v5652_v55  ;;  %v5736_v55 = vld [vmem:[#allocation5 + $0x864] ss:$16 sps:$4 sm:$0xff]   ;;  %v5734_v37 = vld [vmem:[#allocation5 + $0x860] ss:$16 sps:$4 sm:$0xff]  }
 0x115   :  { %3705 = vmatpush1.bf16.msra.mxu1 %v5653_v40  ;;  %v5742_v40 = vld [vmem:[#allocation5 + $0x884] ss:$16 sps:$4 sm:$0xff]  }
 0x116   :  { %3447 = vmatpush1.bf16.msra.mxu0 %v5650_v39  ;;  %3706 = vmatprep.subr.bf16.mxu1 %v5661_v42  ;;  %v5737_v39 = vld [vmem:[#allocation5 + $0x468] ss:$16 sps:$4 sm:$0xff]   ;;  %v5740_v42 = vld [vmem:[#allocation5 + $0x880] ss:$16 sps:$4 sm:$0xff]  }
 0x117   :  { %3448 = vmatprep.subr.bf16.mxu0 %v5658_v41  ;;  %v5745_v41 = vld [vmem:[#allocation5 + $0x48c] ss:$16 sps:$4 sm:$0xff]  }
 0x119   :  { %3707 = vmatpush1.bf16.msra.mxu1 %v5659_v44  ;;  %v5751_v44 = vld [vmem:[#allocation5 + $0x4ac] ss:$16 sps:$4 sm:$0xff]  }
 0x11a   :  { %3449 = vmatpush1.bf16.msra.mxu0 %v5656_v43  ;;  %3708 = vmatprep.subr.bf16.mxu1 %v5667_v46  ;;  %v5748_v43 = vld [vmem:[#allocation5 + $0x8a4] ss:$16 sps:$4 sm:$0xff]   ;;  %v5749_v46 = vld [vmem:[#allocation5 + $0x4a8] ss:$16 sps:$4 sm:$0xff]  }
 0x11b   :  { %3450 = vmatprep.subr.bf16.mxu0 %v5664_v45  ;;  %v5746_v45 = vld [vmem:[#allocation5 + $0x8a0] ss:$16 sps:$4 sm:$0xff]  }
 0x11d   :  { %3709 = vmatpush1.bf16.msra.mxu1 %v5665_v48  ;;  %v5757_v48 = vld [vmem:[#allocation5 + $0x4cc] ss:$16 sps:$4 sm:$0xff]  }
 0x11e   :  { %3451 = vmatpush1.bf16.msra.mxu0 %v5662_v47  ;;  %3710 = vmatprep.subr.bf16.mxu1 %v5673_v50  ;;  %v5754_v47 = vld [vmem:[#allocation5 + $0x8c4] ss:$16 sps:$4 sm:$0xff]   ;;  %v5755_v50 = vld [vmem:[#allocation5 + $0x4c8] ss:$16 sps:$4 sm:$0xff]  }
 0x11f   :  { %3452 = vmatprep.subr.bf16.mxu0 %v5670_v49  ;;  %v5752_v49 = vld [vmem:[#allocation5 + $0x8c0] ss:$16 sps:$4 sm:$0xff]  }
 0x121   :  { %3711 = vmatpush1.bf16.msra.mxu1 %v5671_v52  ;;  %v5763_v52 = vld [vmem:[#allocation5 + $0x4ec] ss:$16 sps:$4 sm:$0xff]  }
 0x122   :  { %3453 = vmatpush1.bf16.msra.mxu0 %v5668_v51  ;;  %3712 = vmatprep.subr.bf16.mxu1 %v5679_v54  ;;  %v5760_v51 = vld [vmem:[#allocation5 + $0x8e4] ss:$16 sps:$4 sm:$0xff]   ;;  %v5761_v54 = vld [vmem:[#allocation5 + $0x4e8] ss:$16 sps:$4 sm:$0xff]  }
 0x123   :  { %3454 = vmatprep.subr.bf16.mxu0 %v5676_v53  ;;  %v5758_v53 = vld [vmem:[#allocation5 + $0x8e0] ss:$16 sps:$4 sm:$0xff]  }
 0x125   :  { %3713 = vmatpush1.bf16.msra.mxu1 %v5677_v57  ;;  %v5769_v57 = vld [vmem:[#allocation5 + $0x50c] ss:$16 sps:$4 sm:$0xff]  }
 0x126   :  { %3455 = vmatpush1.bf16.msra.mxu0 %v5674_v56  ;;  %3714 = vmatprep.subr.bf16.mxu1 %v5685_v59  ;;  %v5766_v56 = vld [vmem:[#allocation5 + $0x904] ss:$16 sps:$4 sm:$0xff]   ;;  %v5767_v59 = vld [vmem:[#allocation5 + $0x508] ss:$16 sps:$4 sm:$0xff]  }
 0x127   :  { %3456 = vmatprep.subr.bf16.mxu0 %v5682_v58  ;;  %v5764_v58 = vld [vmem:[#allocation5 + $0x900] ss:$16 sps:$4 sm:$0xff]  }
 0x129   :  { %3715 = vmatpush1.bf16.msra.mxu1 %v5683_v61  ;;  %v5775_v61 = vld [vmem:[#allocation5 + $0x52c] ss:$16 sps:$4 sm:$0xff]  }
 0x12a   :  { %3457 = vmatpush1.bf16.msra.mxu0 %v5680_v60  ;;  %3716 = vmatprep.subr.bf16.mxu1 %v5691_v63  ;;  %v5772_v60 = vld [vmem:[#allocation5 + $0x924] ss:$16 sps:$4 sm:$0xff]   ;;  %v5773_v63 = vld [vmem:[#allocation5 + $0x528] ss:$16 sps:$4 sm:$0xff]  }
 0x12b   :  { %3458 = vmatprep.subr.bf16.mxu0 %v5688_v62  ;;  %v5770_v62 = vld [vmem:[#allocation5 + $0x920] ss:$16 sps:$4 sm:$0xff]  }
 0x12d   :  { %3717 = vmatpush1.bf16.msra.mxu1 %v5689_v1  ;;  %v5781_v1 = vld [vmem:[#allocation5 + $0x54c] ss:$16 sps:$4 sm:$0xff]  }
 0x12e   :  { %3459 = vmatpush1.bf16.msra.mxu0 %v5686_v0  ;;  %3718 = vmatprep.subr.bf16.mxu1 %v5697_v3  ;;  %v5778_v0 = vld [vmem:[#allocation5 + $0x944] ss:$16 sps:$4 sm:$0xff]   ;;  %v5779_v3 = vld [vmem:[#allocation5 + $0x548] ss:$16 sps:$4 sm:$0xff]  }
 0x12f   :  { %3460 = vmatprep.subr.bf16.mxu0 %v5694_v2  ;;  %v5776_v2 = vld [vmem:[#allocation5 + $0x940] ss:$16 sps:$4 sm:$0xff]  }
 0x131   :  { %3719 = vmatpush1.bf16.msra.mxu1 %v5695_v5  ;;  %v5787_v5 = vld [vmem:[#allocation5 + $0x56c] ss:$16 sps:$4 sm:$0xff]  }
 0x132   :  { %3461 = vmatpush1.bf16.msra.mxu0 %v5692_v4  ;;  %3720 = vmatprep.subr.bf16.mxu1 %v5703_v7  ;;  %v5784_v4 = vld [vmem:[#allocation5 + $0x964] ss:$16 sps:$4 sm:$0xff]   ;;  %v5785_v7 = vld [vmem:[#allocation5 + $0x568] ss:$16 sps:$4 sm:$0xff]  }
 0x133   :  { %3462 = vmatprep.subr.bf16.mxu0 %v5700_v6  ;;  %v5782_v6 = vld [vmem:[#allocation5 + $0x960] ss:$16 sps:$4 sm:$0xff]  }
 0x135   :  { %3721 = vmatpush1.bf16.msra.mxu1 %v5701_v11  ;;  %v5793_v11 = vld [vmem:[#allocation5 + $0x58c] ss:$16 sps:$4 sm:$0xff]  }
 0x136   :  { %3463 = vmatpush1.bf16.msra.mxu0 %v5698_v10  ;;  %3722 = vmatprep.subr.bf16.mxu1 %v5709_v13  ;;  %v5790_v10 = vld [vmem:[#allocation5 + $0x984] ss:$16 sps:$4 sm:$0xff]   ;;  %v5791_v13 = vld [vmem:[#allocation5 + $0x588] ss:$16 sps:$4 sm:$0xff]  }
 0x137   :  { %3464 = vmatprep.subr.bf16.mxu0 %v5706_v12  ;;  %v5788_v12 = vld [vmem:[#allocation5 + $0x980] ss:$16 sps:$4 sm:$0xff]  }
 0x139   :  { %3723 = vmatpush1.bf16.msra.mxu1 %v5707_v15  ;;  %v5799_v15 = vld [vmem:[#allocation5 + $0x5ac] ss:$16 sps:$4 sm:$0xff]  }
 0x13a   :  { %3465 = vmatpush1.bf16.msra.mxu0 %v5704_v14  ;;  %3724 = vmatprep.subr.bf16.mxu1 %v5715_v18  ;;  %v5796_v14 = vld [vmem:[#allocation5 + $0x9a4] ss:$16 sps:$4 sm:$0xff]   ;;  %v5797_v18 = vld [vmem:[#allocation5 + $0x5a8] ss:$16 sps:$4 sm:$0xff]  }
 0x13b   :  { %3466 = vmatprep.subr.bf16.mxu0 %v5712_v17  ;;  %v5794_v17 = vld [vmem:[#allocation5 + $0x9a0] ss:$16 sps:$4 sm:$0xff]  }
 0x13d   :  { %3725 = vmatpush1.bf16.msra.mxu1 %v5713_v20  ;;  %v5805_v20 = vld [vmem:[#allocation5 + $0x5cc] ss:$16 sps:$4 sm:$0xff]  }
 0x13e   :  { %3467 = vmatpush1.bf16.msra.mxu0 %v5710_v19  ;;  %3737 = vmatprep.subr.bf16.mxu1 %v5721_v24  ;;  %v5802_v19 = vld [vmem:[#allocation5 + $0x9c4] ss:$16 sps:$4 sm:$0xff]   ;;  %v5803_v24 = vld [vmem:[#allocation5 + $0x5c8] ss:$16 sps:$4 sm:$0xff]  }
 0x13f   :  { %3479 = vmatprep.subr.bf16.mxu0 %v5718_v23  ;;  %v5800_v23 = vld [vmem:[#allocation5 + $0x9c0] ss:$16 sps:$4 sm:$0xff]  }
 0x140   :  { %3727 = vmatmul.mubr.bf16.vlgmr.msra.gmra.mrb[4].mxu1 %v6642_v9  ;;  %v5739_v9 = vld [vmem:[#allocation5 + $0x46c] ss:$16 sps:$4 sm:$0xff]  }
 0x141   :  { %3469 = vmatmul.mubr.bf16.vlgmr.msra.gmra.mrb[0].mxu0 %v6673_v27  ;;  %3738 = vmatpush1.bf16.msra.mxu1 %v5719_v8  ;;  %v5811_v8 = vld [vmem:[#allocation5 + $0x5ec] ss:$16 sps:$4 sm:$0xff]  }
 0x142   :  { %3480 = vmatpush1.bf16.msra.mxu0 %v5716_v26  ;;  %3739 = vmatprep.subr.bf16.mxu1 %v5727_v31  ;;  %v5808_v26 = vld [vmem:[#allocation5 + $0x9e4] ss:$16 sps:$4 sm:$0xff]   ;;  %v5809_v31 = vld [vmem:[#allocation5 + $0x5e8] ss:$16 sps:$4 sm:$0xff]  }
 0x143   :  { %3481 = vmatprep.subr.bf16.mxu0 %v5724_v30  ;;  %3511 = vmatprep.mubr.bf16.mxu0 %v6681_v32  ;;  %v5806_v30 = vld [vmem:[#allocation5 + $0x9e0] ss:$16 sps:$4 sm:$0xff]  }
 0x144   :  { %3769 = vmatprep.mubr.bf16.mxu1 %v6652_v38  ;;  %v5743_v38 = vld [vmem:[#allocation5 + $0x488] ss:$16 sps:$4 sm:$0xff]  }
 0x145   :  { %3740 = vmatpush1.bf16.msra.mxu1 %v5725_v22  ;;  %v5817_v22 = vld [vmem:[#allocation5 + $0x60c] ss:$16 sps:$4 sm:$0xff]  }
 0x146   :  { %3482 = vmatpush1.bf16.msra.mxu0 %v5722_v21  ;;  %3741 = vmatprep.subr.bf16.mxu1 %v5733_v34  ;;  %v5814_v21 = vld [vmem:[#allocation5 + $0xa04] ss:$16 sps:$4 sm:$0xff]   ;;  %v6687_v34 = vld [vmem:[#allocation2 + $0x28] sm:$0xff] }
 0x147   :  { %3483 = vmatprep.subr.bf16.mxu0 %v5730_v33  ;;  %v5812_v33 = vld [vmem:[#allocation5 + $0xa00] ss:$16 sps:$4 sm:$0xff]  }
 0x149   :  { %3742 = vmatpush1.bf16.msra.mxu1 %v5731_v36  ;;  %v6693_v36 = vld [vmem:[#allocation2 + $0x68] sm:$0xff] }
 0x14a   :  { %3484 = vmatpush1.bf16.msra.mxu0 %v5728_v35  ;;  %3743 = vmatprep.subr.bf16.mxu1 %v5739_v9  ;;  %v6691_v35 = vcombine.low %v6675_v28, %v6677_v29  ;;  %v5820_v9 = vld [vmem:[#allocation5 + $0xa24] ss:$16 sps:$4 sm:$0xff]   ;;  %v5818_v28 = vld [vmem:[#allocation5 + $0xa20] ss:$16 sps:$4 sm:$0xff]   ;;  %v5821_v29 = vld [vmem:[#allocation5 + $0x628] ss:$16 sps:$4 sm:$0xff]  }
 0x14b   :  { %3485 = vmatprep.subr.bf16.mxu0 %v5736_v55  ;;  %v5815_v55 = vld [vmem:[#allocation5 + $0x608] ss:$16 sps:$4 sm:$0xff]  }
 0x14d   :  { %3744 = vmatpush1.bf16.msra.mxu1 %v5737_v39  ;;  %v6697_v39 = vcombine.high %v6687_v34, %v6693_v36 }
 0x14e   :  { %3486 = vmatpush1.bf16.msra.mxu0 %v5734_v37  ;;  %3745 = vmatprep.subr.bf16.mxu1 %v5745_v41  ;;  %v5823_v37 = vld [vmem:[#allocation5 + $0x62c] ss:$16 sps:$4 sm:$0xff]  }
 0x14f   :  { %3487 = vmatprep.subr.bf16.mxu0 %v5742_v40  ;;  %v5826_v40 = vld [vmem:[#allocation5 + $0xa44] ss:$16 sps:$4 sm:$0xff]   ;;  %v5829_v41 = vld [vmem:[#allocation5 + $0x64c] ss:$16 sps:$4 sm:$0xff]  }
 0x151   :  { %3746 = vmatpush1.bf16.msra.mxu1 %v5743_v38  ;;  %v5827_v38 = vld [vmem:[#allocation5 + $0x648] ss:$16 sps:$4 sm:$0xff]  }
 0x152   :  { %3488 = vmatpush1.bf16.msra.mxu0 %v5740_v42  ;;  %3747 = vmatprep.subr.bf16.mxu1 %v5751_v44  ;;  %v5824_v42 = vld [vmem:[#allocation5 + $0xa40] ss:$16 sps:$4 sm:$0xff]  }
 0x153   :  { %3489 = vmatprep.subr.bf16.mxu0 %v5748_v43  ;;  %v5832_v43 = vld [vmem:[#allocation5 + $0xa64] ss:$16 sps:$4 sm:$0xff]   ;;  %v5830_v44 = vld [vmem:[#allocation5 + $0xa60] ss:$16 sps:$4 sm:$0xff]  }
 0x155   :  { %3748 = vmatpush1.bf16.msra.mxu1 %v5749_v46  ;;  %v5838_v46 = vld [vmem:[#allocation5 + $0xa84] ss:$16 sps:$4 sm:$0xff]  }
 0x156   :  { %3490 = vmatpush1.bf16.msra.mxu0 %v5746_v45  ;;  %3749 = vmatprep.subr.bf16.mxu1 %v5757_v48  ;;  %v5833_v45 = vld [vmem:[#allocation5 + $0x668] ss:$16 sps:$4 sm:$0xff]   ;;  %v5836_v48 = vld [vmem:[#allocation5 + $0xa80] ss:$16 sps:$4 sm:$0xff]  }
 0x157   :  { %3491 = vmatprep.subr.bf16.mxu0 %v5754_v47  ;;  %v5841_v47 = vld [vmem:[#allocation5 + $0x68c] ss:$16 sps:$4 sm:$0xff]  }
 0x159   :  { %3750 = vmatpush1.bf16.msra.mxu1 %v5755_v50  ;;  %v5847_v50 = vld [vmem:[#allocation5 + $0x6ac] ss:$16 sps:$4 sm:$0xff]  }
 0x15a   :  { %3492 = vmatpush1.bf16.msra.mxu0 %v5752_v49  ;;  %3751 = vmatprep.subr.bf16.mxu1 %v5763_v52  ;;  %v5844_v49 = vld [vmem:[#allocation5 + $0xaa4] ss:$16 sps:$4 sm:$0xff]   ;;  %v5845_v52 = vld [vmem:[#allocation5 + $0x6a8] ss:$16 sps:$4 sm:$0xff]  }
 0x15b   :  { %3493 = vmatprep.subr.bf16.mxu0 %v5760_v51  ;;  %v5842_v51 = vld [vmem:[#allocation5 + $0xaa0] ss:$16 sps:$4 sm:$0xff]  }
 0x15d   :  { %3752 = vmatpush1.bf16.msra.mxu1 %v5761_v54  ;;  %v5853_v54 = vld [vmem:[#allocation5 + $0x6cc] ss:$16 sps:$4 sm:$0xff]  }
 0x15e   :  { %3494 = vmatpush1.bf16.msra.mxu0 %v5758_v53  ;;  %3753 = vmatprep.subr.bf16.mxu1 %v5769_v57  ;;  %v5850_v53 = vld [vmem:[#allocation5 + $0xac4] ss:$16 sps:$4 sm:$0xff]  }
 0x15f   :  { %3495 = vmatprep.subr.bf16.mxu0 %v5766_v56 }
 0x161   :  { %3754 = vmatpush1.bf16.msra.mxu1 %v5767_v59  ;;  %v5848_v59 = vld [vmem:[#allocation5 + $0xac0] ss:$16 sps:$4 sm:$0xff]  }
 0x162   :  { %3496 = vmatpush1.bf16.msra.mxu0 %v5764_v58  ;;  %3755 = vmatprep.subr.bf16.mxu1 %v5775_v61 }
 0x163   :  { %3497 = vmatprep.subr.bf16.mxu0 %v5772_v60  ;;  %v5851_v60 = vld [vmem:[#allocation5 + $0x6c8] ss:$16 sps:$4 sm:$0xff]  }
 0x165   :  { %3756 = vmatpush1.bf16.msra.mxu1 %v5773_v63  ;;  %v5859_v63 = vld [vmem:[#allocation5 + $0x6ec] ss:$16 sps:$4 sm:$0xff]  }
 0x166   :  { %3498 = vmatpush1.bf16.msra.mxu0 %v5770_v62  ;;  %3757 = vmatprep.subr.bf16.mxu1 %v5781_v1  ;;  %v5856_v62 = vld [vmem:[#allocation5 + $0xae4] ss:$16 sps:$4 sm:$0xff]   ;;  %v5857_v1 = vld [vmem:[#allocation5 + $0x6e8] ss:$16 sps:$4 sm:$0xff]  }
 0x167   :  { %3499 = vmatprep.subr.bf16.mxu0 %v5778_v0  ;;  %v5854_v0 = vld [vmem:[#allocation5 + $0xae0] ss:$16 sps:$4 sm:$0xff]  }
 0x169   :  { %3758 = vmatpush1.bf16.msra.mxu1 %v5779_v3  ;;  %v5865_v3 = vld [vmem:[#allocation5 + $0x70c] ss:$16 sps:$4 sm:$0xff]  }
 0x16a   :  { %3500 = vmatpush1.bf16.msra.mxu0 %v5776_v2  ;;  %3759 = vmatprep.subr.bf16.mxu1 %v5787_v5  ;;  %v5862_v2 = vld [vmem:[#allocation5 + $0xb04] ss:$16 sps:$4 sm:$0xff]   ;;  %v5863_v5 = vld [vmem:[#allocation5 + $0x708] ss:$16 sps:$4 sm:$0xff]  }
 0x16b   :  { %3501 = vmatprep.subr.bf16.mxu0 %v5784_v4  ;;  %v5860_v4 = vld [vmem:[#allocation5 + $0xb00] ss:$16 sps:$4 sm:$0xff]  }
 0x16d   :  { %3760 = vmatpush1.bf16.msra.mxu1 %v5785_v7  ;;  %v5871_v7 = vld [vmem:[#allocation5 + $0x72c] ss:$16 sps:$4 sm:$0xff]  }
 0x16e   :  { %3502 = vmatpush1.bf16.msra.mxu0 %v5782_v6  ;;  %3761 = vmatprep.subr.bf16.mxu1 %v5793_v11  ;;  %v5868_v6 = vld [vmem:[#allocation5 + $0xb24] ss:$16 sps:$4 sm:$0xff]   ;;  %v5869_v11 = vld [vmem:[#allocation5 + $0x728] ss:$16 sps:$4 sm:$0xff]  }
 0x16f   :  { %3503 = vmatprep.subr.bf16.mxu0 %v5790_v10  ;;  %v5866_v10 = vld [vmem:[#allocation5 + $0xb20] ss:$16 sps:$4 sm:$0xff]  }
 0x171   :  { %3762 = vmatpush1.bf16.msra.mxu1 %v5791_v13  ;;  %v5877_v13 = vld [vmem:[#allocation5 + $0x74c] ss:$16 sps:$4 sm:$0xff]  }
 0x172   :  { %3504 = vmatpush1.bf16.msra.mxu0 %v5788_v12  ;;  %3763 = vmatprep.subr.bf16.mxu1 %v5799_v15  ;;  %v5874_v12 = vld [vmem:[#allocation5 + $0xb44] ss:$16 sps:$4 sm:$0xff]   ;;  %v5875_v15 = vld [vmem:[#allocation5 + $0x748] ss:$16 sps:$4 sm:$0xff]  }
 0x173   :  { %3505 = vmatprep.subr.bf16.mxu0 %v5796_v14  ;;  %v5872_v14 = vld [vmem:[#allocation5 + $0xb40] ss:$16 sps:$4 sm:$0xff]  }
 0x175   :  { %3764 = vmatpush1.bf16.msra.mxu1 %v5797_v18  ;;  %v5883_v18 = vld [vmem:[#allocation5 + $0x76c] ss:$16 sps:$4 sm:$0xff]  }
 0x176   :  { %3506 = vmatpush1.bf16.msra.mxu0 %v5794_v17  ;;  %3765 = vmatprep.subr.bf16.mxu1 %v5805_v20  ;;  %v5880_v17 = vld [vmem:[#allocation5 + $0xb64] ss:$16 sps:$4 sm:$0xff]   ;;  %v5881_v20 = vld [vmem:[#allocation5 + $0x768] ss:$16 sps:$4 sm:$0xff]  }
 0x177   :  { %3507 = vmatprep.subr.bf16.mxu0 %v5802_v19  ;;  %v5878_v19 = vld [vmem:[#allocation5 + $0xb60] ss:$16 sps:$4 sm:$0xff]  }
 0x179   :  { %3766 = vmatpush1.bf16.msra.mxu1 %v5803_v24  ;;  %v5889_v24 = vld [vmem:[#allocation5 + $0x78c] ss:$16 sps:$4 sm:$0xff]  }
 0x17a   :  { %3508 = vmatpush1.bf16.msra.mxu0 %v5800_v23  ;;  %3767 = vmatprep.subr.bf16.mxu1 %v5811_v8  ;;  %v5886_v23 = vld [vmem:[#allocation5 + $0xb84] ss:$16 sps:$4 sm:$0xff]   ;;  %v5887_v8 = vld [vmem:[#allocation5 + $0x788] ss:$16 sps:$4 sm:$0xff]  }
 0x17b   :  { %3509 = vmatprep.subr.bf16.mxu0 %v5808_v26  ;;  %v5884_v26 = vld [vmem:[#allocation5 + $0xb80] ss:$16 sps:$4 sm:$0xff]  }
 0x17d   :  { %3768 = vmatpush1.bf16.msra.mxu1 %v5809_v31  ;;  %v5895_v31 = vld [vmem:[#allocation5 + $0x7ac] ss:$16 sps:$4 sm:$0xff]  }
 0x17e   :  { %3510 = vmatpush1.bf16.msra.mxu0 %v5806_v30  ;;  %3780 = vmatprep.subr.bf16.mxu1 %v5817_v22  ;;  %v5892_v30 = vld [vmem:[#allocation5 + $0xba4] ss:$16 sps:$4 sm:$0xff]   ;;  %v5893_v22 = vld [vmem:[#allocation5 + $0x7a8] ss:$16 sps:$4 sm:$0xff]  }
 0x17f   :  { %3522 = vmatprep.subr.bf16.mxu0 %v5814_v21  ;;  %v5890_v21 = vld [vmem:[#allocation5 + $0xba0] ss:$16 sps:$4 sm:$0xff]  }
 0x180   :  { %3770 = vmatmul.mubr.bf16.vlgmr.msra.gmra.mrb[4].mxu1 %v6657_v16  ;;  %v5835_v16 = vld [vmem:[#allocation5 + $0x66c] ss:$16 sps:$4 sm:$0xff]  }
 0x181   :  { %3512 = vmatmul.mubr.bf16.vlgmr.msra.gmra.mrb[0].mxu0 %v6691_v35  ;;  %3781 = vmatpush1.bf16.msra.mxu1 %v5815_v55  ;;  %v5901_v55 = vld [vmem:[#allocation5 + $0x7cc] ss:$16 sps:$4 sm:$0xff]  }
 0x182   :  { %3523 = vmatpush1.bf16.msra.mxu0 %v5812_v33  ;;  %3782 = vmatprep.subr.bf16.mxu1 %v5823_v37  ;;  %v5898_v33 = vld [vmem:[#allocation5 + $0xbc4] ss:$16 sps:$4 sm:$0xff]   ;;  %v5899_v37 = vld [vmem:[#allocation5 + $0x7c8] ss:$16 sps:$4 sm:$0xff]  }
 0x183   :  { %3524 = vmatprep.subr.bf16.mxu0 %v5820_v9  ;;  %3554 = vmatprep.mubr.bf16.mxu0 %v6697_v39  ;;  %v5896_v9 = vld [vmem:[#allocation5 + $0xbc0] ss:$16 sps:$4 sm:$0xff]  }
 0x184   :  { %3812 = vmatprep.mubr.bf16.mxu1 %v6667_v25  ;;  %v5839_v25 = vld [vmem:[#allocation5 + $0x688] ss:$16 sps:$4 sm:$0xff]  }
 0x185   :  { %3783 = vmatpush1.bf16.msra.mxu1 %v5821_v29  ;;  %v5907_v29 = vld [vmem:[#allocation5 + $0x7ec] ss:$16 sps:$4 sm:$0xff]  }
 0x186   :  { %3525 = vmatpush1.bf16.msra.mxu0 %v5818_v28  ;;  %3784 = vmatprep.subr.bf16.mxu1 %v5829_v41  ;;  %v5904_v28 = vld [vmem:[#allocation5 + $0xbe4] ss:$16 sps:$4 sm:$0xff]   ;;  %v5905_v41 = vld [vmem:[#allocation5 + $0x7e8] ss:$16 sps:$4 sm:$0xff]  }
 0x187   :  { %3526 = vmatprep.subr.bf16.mxu0 %v5826_v40  ;;  %v5902_v40 = vld [vmem:[#allocation5 + $0xbe0] ss:$16 sps:$4 sm:$0xff]  }
 0x189   :  { %3785 = vmatpush1.bf16.msra.mxu1 %v5827_v38  ;;  %v5913_v38 = vld [vmem:[#allocation5 + $0x80c] ss:$16 sps:$4 sm:$0xff]  }
 0x18a   :  { %3527 = vmatpush1.bf16.msra.mxu0 %v5824_v42  ;;  %3786 = vmatprep.subr.bf16.mxu1 %v5835_v16  ;;  %v5910_v42 = vld [vmem:[#allocation5 + $0xc04] ss:$16 sps:$4 sm:$0xff]   ;;  %v5911_v16 = vld [vmem:[#allocation5 + $0x808] ss:$16 sps:$4 sm:$0xff]  }
 0x18b   :  { %3528 = vmatprep.subr.bf16.mxu0 %v5832_v43  ;;  %v5908_v43 = vld [vmem:[#allocation5 + $0xc00] ss:$16 sps:$4 sm:$0xff]  }
 0x18d   :  { %3787 = vmatpush1.bf16.msra.mxu1 %v5833_v45  ;;  %v5916_v45 = vld [vmem:[#allocation5 + $0xc24] ss:$16 sps:$4 sm:$0xff]  }
 0x18e   :  { %3529 = vmatpush1.bf16.msra.mxu0 %v5830_v44  ;;  %3788 = vmatprep.subr.bf16.mxu1 %v5841_v47  ;;  %v6713_v44 = vcombine.low %v6687_v34, %v6693_v36  ;;  %v6717_v47 = vld [vmem:[#allocation2 + $0x70] sm:$0xff]  ;;  %v5925_v36 = vld [vmem:[#allocation5 + $0x84c] ss:$16 sps:$4 sm:$0xff]  }
 0x18f   :  { %3530 = vmatprep.subr.bf16.mxu0 %v5838_v46  ;;  %v6715_v46 = vld [vmem:[#allocation2 + $0x30] sm:$0xff] }
 0x190   :  { %v5922_v34 = vld [vmem:[#allocation5 + $0xc44] ss:$16 sps:$4 sm:$0xff]  }
 0x191   :  { %3789 = vmatpush1.bf16.msra.mxu1 %v5839_v25  ;;  %v5914_v25 = vld [vmem:[#allocation5 + $0xc20] ss:$16 sps:$4 sm:$0xff]  }
 0x192   :  { %3531 = vmatpush1.bf16.msra.mxu0 %v5836_v48  ;;  %3790 = vmatprep.subr.bf16.mxu1 %v5847_v50  ;;  %v5919_v48 = vld [vmem:[#allocation5 + $0x82c] ss:$16 sps:$4 sm:$0xff]   ;;  %v6721_v50 = vcombine.high %v6715_v46, %v6717_v47 }
 0x193   :  { %3532 = vmatprep.subr.bf16.mxu0 %v5844_v49  ;;  %v6703_v56 = vpop.f32.mrb[0].mxu1  ;;  %v5917_v49 = vld [vmem:[#allocation5 + $0x828] ss:$16 sps:$4 sm:$0xff]  }
 0x194   :  { %v6705_v57 = vpop.f32.mrb[1].mxu1 }
 0x195   :  { %v6707_v58 = vpop.f32.mrb[2].mxu1  ;;  %3791 = vmatpush1.bf16.msra.mxu1 %v5845_v52  ;;  %v5923_v52 = vld [vmem:[#allocation5 + $0x848] ss:$16 sps:$4 sm:$0xff]  }
 0x196   :  { %3533 = vmatpush1.bf16.msra.mxu0 %v5842_v51  ;;  %v6709_v61 = vpop.f32.mrb[3].mxu1  ;;  %3792 = vmatprep.subr.bf16.mxu1 %v5853_v54  ;;  %v5920_v51 = vld [vmem:[#allocation5 + $0xc40] ss:$16 sps:$4 sm:$0xff]   ;;  %v5931_v54 = vld [vmem:[#allocation5 + $0x86c] ss:$16 sps:$4 sm:$0xff]  }
 0x197   :  { %3534 = vmatprep.subr.bf16.mxu0 %v5850_v53  ;;  %v5928_v53 = vld [vmem:[#allocation5 + $0xc64] ss:$16 sps:$4 sm:$0xff]  }
 0x199   :  { %3793 = vmatpush1.bf16.msra.mxu1 %v5851_v60  ;;  %v5934_v60 = vld [vmem:[#allocation5 + $0xc84] ss:$16 sps:$4 sm:$0xff]  }
 0x19a   :  { %3535 = vmatpush1.bf16.msra.mxu0 %v5848_v59  ;;  %3794 = vmatprep.subr.bf16.mxu1 %v5859_v63  ;;  %v5926_v59 = vld [vmem:[#allocation5 + $0xc60] ss:$16 sps:$4 sm:$0xff]  }
 0x19b   :  { %3536 = vmatprep.subr.bf16.mxu0 %v5856_v62  ;;  %v5937_v62 = vld [vmem:[#allocation5 + $0x88c] ss:$16 sps:$4 sm:$0xff]   ;;  %v5932_v63 = vld [vmem:[#allocation5 + $0xc80] ss:$16 sps:$4 sm:$0xff]  }
 0x19d   :  { %3795 = vmatpush1.bf16.msra.mxu1 %v5857_v1  ;;  %v5940_v1 = vld [vmem:[#allocation5 + $0xca4] ss:$16 sps:$4 sm:$0xff]  }
 0x19e   :  { %3537 = vmatpush1.bf16.msra.mxu0 %v5854_v0  ;;  %3796 = vmatprep.subr.bf16.mxu1 %v5865_v3  ;;  %v5935_v0 = vld [vmem:[#allocation5 + $0x888] ss:$16 sps:$4 sm:$0xff]  }
 0x19f   :  { %3538 = vmatprep.subr.bf16.mxu0 %v5862_v2  ;;  %v5938_v2 = vld [vmem:[#allocation5 + $0xca0] ss:$16 sps:$4 sm:$0xff]   ;;  %v5941_v3 = vld [vmem:[#allocation5 + $0x8a8] ss:$16 sps:$4 sm:$0xff]  }
 0x1a1   :  { %3797 = vmatpush1.bf16.msra.mxu1 %v5863_v5  ;;  %v5949_v5 = vld [vmem:[#allocation5 + $0x8cc] ss:$16 sps:$4 sm:$0xff]  }
 0x1a2   :  { %3539 = vmatpush1.bf16.msra.mxu0 %v5860_v4  ;;  %3798 = vmatprep.subr.bf16.mxu1 %v5871_v7  ;;  %v5946_v4 = vld [vmem:[#allocation5 + $0xcc4] ss:$16 sps:$4 sm:$0xff]   ;;  %v5947_v7 = vld [vmem:[#allocation5 + $0x8c8] ss:$16 sps:$4 sm:$0xff]  }
 0x1a3   :  { %3540 = vmatprep.subr.bf16.mxu0 %v5868_v6  ;;  %v5944_v6 = vld [vmem:[#allocation5 + $0xcc0] ss:$16 sps:$4 sm:$0xff]  }
 0x1a5   :  { %3799 = vmatpush1.bf16.msra.mxu1 %v5869_v11  ;;  %v5955_v11 = vld [vmem:[#allocation5 + $0x8ec] ss:$16 sps:$4 sm:$0xff]  }
 0x1a6   :  { %3541 = vmatpush1.bf16.msra.mxu0 %v5866_v10  ;;  %3800 = vmatprep.subr.bf16.mxu1 %v5877_v13  ;;  %v5952_v10 = vld [vmem:[#allocation5 + $0xce4] ss:$16 sps:$4 sm:$0xff]   ;;  %v5953_v13 = vld [vmem:[#allocation5 + $0x8e8] ss:$16 sps:$4 sm:$0xff]  }
 0x1a7   :  { %3542 = vmatprep.subr.bf16.mxu0 %v5874_v12  ;;  %v5950_v12 = vld [vmem:[#allocation5 + $0xce0] ss:$16 sps:$4 sm:$0xff]  }
 0x1a9   :  { %3801 = vmatpush1.bf16.msra.mxu1 %v5875_v15  ;;  %v5961_v15 = vld [vmem:[#allocation5 + $0x90c] ss:$16 sps:$4 sm:$0xff]  }
 0x1aa   :  { %3543 = vmatpush1.bf16.msra.mxu0 %v5872_v14  ;;  %3802 = vmatprep.subr.bf16.mxu1 %v5883_v18  ;;  %v5958_v14 = vld [vmem:[#allocation5 + $0xd04] ss:$16 sps:$4 sm:$0xff]   ;;  %v5959_v18 = vld [vmem:[#allocation5 + $0x908] ss:$16 sps:$4 sm:$0xff]  }
 0x1ab   :  { %3544 = vmatprep.subr.bf16.mxu0 %v5880_v17  ;;  %v5956_v17 = vld [vmem:[#allocation5 + $0xd00] ss:$16 sps:$4 sm:$0xff]  }
 0x1ad   :  { %3803 = vmatpush1.bf16.msra.mxu1 %v5881_v20  ;;  %v5967_v20 = vld [vmem:[#allocation5 + $0x92c] ss:$16 sps:$4 sm:$0xff]  }
 0x1ae   :  { %3545 = vmatpush1.bf16.msra.mxu0 %v5878_v19  ;;  %3804 = vmatprep.subr.bf16.mxu1 %v5889_v24  ;;  %v5964_v19 = vld [vmem:[#allocation5 + $0xd24] ss:$16 sps:$4 sm:$0xff]   ;;  %v5965_v24 = vld [vmem:[#allocation5 + $0x928] ss:$16 sps:$4 sm:$0xff]  }
 0x1af   :  { %3546 = vmatprep.subr.bf16.mxu0 %v5886_v23  ;;  %v5962_v23 = vld [vmem:[#allocation5 + $0xd20] ss:$16 sps:$4 sm:$0xff]  }
 0x1b1   :  { %3805 = vmatpush1.bf16.msra.mxu1 %v5887_v8  ;;  %v5973_v8 = vld [vmem:[#allocation5 + $0x94c] ss:$16 sps:$4 sm:$0xff]  }
 0x1b2   :  { %3547 = vmatpush1.bf16.msra.mxu0 %v5884_v26  ;;  %3806 = vmatprep.subr.bf16.mxu1 %v5895_v31  ;;  %v5970_v26 = vld [vmem:[#allocation5 + $0xd44] ss:$16 sps:$4 sm:$0xff]   ;;  %v5971_v31 = vld [vmem:[#allocation5 + $0x948] ss:$16 sps:$4 sm:$0xff]  }
 0x1b3   :  { %3548 = vmatprep.subr.bf16.mxu0 %v5892_v30  ;;  %v5968_v30 = vld [vmem:[#allocation5 + $0xd40] ss:$16 sps:$4 sm:$0xff]  }
 0x1b5   :  { %3807 = vmatpush1.bf16.msra.mxu1 %v5893_v22  ;;  %v5979_v22 = vld [vmem:[#allocation5 + $0x96c] ss:$16 sps:$4 sm:$0xff]  }
 0x1b6   :  { %3549 = vmatpush1.bf16.msra.mxu0 %v5890_v21  ;;  %3808 = vmatprep.subr.bf16.mxu1 %v5901_v55  ;;  %v5976_v21 = vld [vmem:[#allocation5 + $0xd64] ss:$16 sps:$4 sm:$0xff]   ;;  %v5977_v55 = vld [vmem:[#allocation5 + $0x968] ss:$16 sps:$4 sm:$0xff]  }
 0x1b7   :  { %3550 = vmatprep.subr.bf16.mxu0 %v5898_v33  ;;  %v5974_v33 = vld [vmem:[#allocation5 + $0xd60] ss:$16 sps:$4 sm:$0xff]  }
 0x1b9   :  { %3809 = vmatpush1.bf16.msra.mxu1 %v5899_v37  ;;  %v5985_v37 = vld [vmem:[#allocation5 + $0x98c] ss:$16 sps:$4 sm:$0xff]  }
 0x1ba   :  { %3551 = vmatpush1.bf16.msra.mxu0 %v5896_v9  ;;  %3810 = vmatprep.subr.bf16.mxu1 %v5907_v29  ;;  %v5982_v9 = vld [vmem:[#allocation5 + $0xd84] ss:$16 sps:$4 sm:$0xff]   ;;  %v5983_v29 = vld [vmem:[#allocation5 + $0x988] ss:$16 sps:$4 sm:$0xff]  }
 0x1bb   :  { %3552 = vmatprep.subr.bf16.mxu0 %v5904_v28  ;;  %v5980_v28 = vld [vmem:[#allocation5 + $0xd80] ss:$16 sps:$4 sm:$0xff]  }
 0x1bd   :  { %3811 = vmatpush1.bf16.msra.mxu1 %v5905_v41  ;;  %v5991_v41 = vld [vmem:[#allocation5 + $0x9ac] ss:$16 sps:$4 sm:$0xff]  }
 0x1be   :  { %3553 = vmatpush1.bf16.msra.mxu0 %v5902_v40  ;;  %3823 = vmatprep.subr.bf16.mxu1 %v5913_v38  ;;  %v5988_v40 = vld [vmem:[#allocation5 + $0xda4] ss:$16 sps:$4 sm:$0xff]   ;;  %v5989_v38 = vld [vmem:[#allocation5 + $0x9a8] ss:$16 sps:$4 sm:$0xff]  }
 0x1bf   :  { %3565 = vmatprep.subr.bf16.mxu0 %v5910_v42  ;;  %v5986_v42 = vld [vmem:[#allocation5 + $0xda0] ss:$16 sps:$4 sm:$0xff]  }
 0x1c0   :  { %3813 = vmatmul.mubr.bf16.vlgmr.msra.gmra.mrb[4].mxu1 %v6673_v27  ;;  %v5929_v27 = vld [vmem:[#allocation5 + $0x868] ss:$16 sps:$4 sm:$0xff]  }
 0x1c1   :  { %3555 = vmatmul.mubr.bf16.vlgmr.msra.gmra.mrb[0].mxu0 %v6713_v44  ;;  %3824 = vmatpush1.bf16.msra.mxu1 %v5911_v16  ;;  %v5997_v16 = vld [vmem:[#allocation5 + $0x9cc] ss:$16 sps:$4 sm:$0xff]  }
 0x1c2   :  { %3566 = vmatpush1.bf16.msra.mxu0 %v5908_v43  ;;  %3825 = vmatprep.subr.bf16.mxu1 %v5919_v48  ;;  %v5994_v43 = vld [vmem:[#allocation5 + $0xdc4] ss:$16 sps:$4 sm:$0xff]   ;;  %v5995_v48 = vld [vmem:[#allocation5 + $0x9c8] ss:$16 sps:$4 sm:$0xff]  }
 0x1c3   :  { %3567 = vmatprep.subr.bf16.mxu0 %v5916_v45  ;;  %3597 = vmatprep.mubr.bf16.mxu0 %v6721_v50  ;;  %v5992_v45 = vld [vmem:[#allocation5 + $0xdc0] ss:$16 sps:$4 sm:$0xff]  }
 0x1c4   :  { %3855 = vmatprep.mubr.bf16.mxu1 %v6681_v32  ;;  %v5943_v32 = vld [vmem:[#allocation5 + $0x8ac] ss:$16 sps:$4 sm:$0xff]  }
 0x1c5   :  { %3826 = vmatpush1.bf16.msra.mxu1 %v5917_v49  ;;  %v6003_v49 = vld [vmem:[#allocation5 + $0x9ec] ss:$16 sps:$4 sm:$0xff]  }
 0x1c6   :  { %3568 = vmatpush1.bf16.msra.mxu0 %v5914_v25  ;;  %3827 = vmatprep.subr.bf16.mxu1 %v5925_v36  ;;  %v6000_v25 = vld [vmem:[#allocation5 + $0xde4] ss:$16 sps:$4 sm:$0xff]   ;;  %v6001_v36 = vld [vmem:[#allocation5 + $0x9e8] ss:$16 sps:$4 sm:$0xff]  }
 0x1c7   :  { %3569 = vmatprep.subr.bf16.mxu0 %v5922_v34  ;;  %v5998_v34 = vld [vmem:[#allocation5 + $0xde0] ss:$16 sps:$4 sm:$0xff]  }
 0x1c9   :  { %3828 = vmatpush1.bf16.msra.mxu1 %v5923_v52  ;;  %v6009_v52 = vld [vmem:[#allocation5 + $0xa0c] ss:$16 sps:$4 sm:$0xff]  }
 0x1ca   :  { %3570 = vmatpush1.bf16.msra.mxu0 %v5920_v51  ;;  %3829 = vmatprep.subr.bf16.mxu1 %v5931_v54  ;;  %v6006_v51 = vld [vmem:[#allocation5 + $0xe04] ss:$16 sps:$4 sm:$0xff]   ;;  %v6731_v54 = vld [vmem:[#allocation2 + $0x38] sm:$0xff] }
 0x1cb   :  { %3571 = vmatprep.subr.bf16.mxu0 %v5928_v53  ;;  %v6729_v53 = vcombine.low %v6715_v46, %v6717_v47  ;;  %v6010_v46 = vld [vmem:[#allocation5 + $0xe20] ss:$16 sps:$4 sm:$0xff]   ;;  %v6013_v47 = vld [vmem:[#allocation5 + $0xa28] ss:$16 sps:$4 sm:$0xff]  }
 0x1cd   :  { %3830 = vmatpush1.bf16.msra.mxu1 %v5929_v27  ;;  %v6004_v27 = vld [vmem:[#allocation5 + $0xe00] ss:$16 sps:$4 sm:$0xff]  }
 0x1ce   :  { %3572 = vmatpush1.bf16.msra.mxu0 %v5926_v59  ;;  %3831 = vmatprep.subr.bf16.mxu1 %v5937_v62  ;;  %v6733_v59 = vld [vmem:[#allocation2 + $0x78] sm:$0xff]  ;;  %v6012_v62 = vld [vmem:[#allocation5 + $0xe24] ss:$16 sps:$4 sm:$0xff]  }
 0x1cf   :  { %3573 = vmatprep.subr.bf16.mxu0 %v5934_v60  ;;  %v6007_v60 = vld [vmem:[#allocation5 + $0xa08] ss:$16 sps:$4 sm:$0xff]  }
 0x1d1   :  { %3832 = vmatpush1.bf16.msra.mxu1 %v5935_v0  ;;  %v6737_v0 = vcombine.high %v6731_v54, %v6733_v59 }
 0x1d2   :  { %3574 = vmatpush1.bf16.msra.mxu0 %v5932_v63  ;;  %3833 = vmatprep.subr.bf16.mxu1 %v5943_v32  ;;  %v6015_v63 = vld [vmem:[#allocation5 + $0xa2c] ss:$16 sps:$4 sm:$0xff]  }
 0x1d3   :  { %3575 = vmatprep.subr.bf16.mxu0 %v5940_v1  ;;  %v6018_v1 = vld [vmem:[#allocation5 + $0xe44] ss:$16 sps:$4 sm:$0xff]   ;;  %v6021_v32 = vld [vmem:[#allocation5 + $0xa4c] ss:$16 sps:$4 sm:$0xff]  }
 0x1d5   :  { %3834 = vmatpush1.bf16.msra.mxu1 %v5941_v3  ;;  %v6019_v3 = vld [vmem:[#allocation5 + $0xa48] ss:$16 sps:$4 sm:$0xff]  }
 0x1d6   :  { %3576 = vmatpush1.bf16.msra.mxu0 %v5938_v2  ;;  %3835 = vmatprep.subr.bf16.mxu1 %v5949_v5  ;;  %v6016_v2 = vld [vmem:[#allocation5 + $0xe40] ss:$16 sps:$4 sm:$0xff]  }
 0x1d7   :  { %3577 = vmatprep.subr.bf16.mxu0 %v5946_v4  ;;  %v6024_v4 = vld [vmem:[#allocation5 + $0xe64] ss:$16 sps:$4 sm:$0xff]   ;;  %v6022_v5 = vld [vmem:[#allocation5 + $0xe60] ss:$16 sps:$4 sm:$0xff]  }
 0x1d9   :  { %3836 = vmatpush1.bf16.msra.mxu1 %v5947_v7  ;;  %v6030_v7 = vld [vmem:[#allocation5 + $0xe84] ss:$16 sps:$4 sm:$0xff]  }
 0x1da   :  { %3578 = vmatpush1.bf16.msra.mxu0 %v5944_v6  ;;  %3837 = vmatprep.subr.bf16.mxu1 %v5955_v11  ;;  %v6025_v6 = vld [vmem:[#allocation5 + $0xa68] ss:$16 sps:$4 sm:$0xff]   ;;  %v6028_v11 = vld [vmem:[#allocation5 + $0xe80] ss:$16 sps:$4 sm:$0xff]  }
 0x1db   :  { %3579 = vmatprep.subr.bf16.mxu0 %v5952_v10  ;;  %v6033_v10 = vld [vmem:[#allocation5 + $0xa8c] ss:$16 sps:$4 sm:$0xff]  }
 0x1dd   :  { %3838 = vmatpush1.bf16.msra.mxu1 %v5953_v13  ;;  %v6039_v13 = vld [vmem:[#allocation5 + $0xaac] ss:$16 sps:$4 sm:$0xff]  }
 0x1de   :  { %3580 = vmatpush1.bf16.msra.mxu0 %v5950_v12  ;;  %3839 = vmatprep.subr.bf16.mxu1 %v5961_v15  ;;  %v6036_v12 = vld [vmem:[#allocation5 + $0xea4] ss:$16 sps:$4 sm:$0xff]   ;;  %v6037_v15 = vld [vmem:[#allocation5 + $0xaa8] ss:$16 sps:$4 sm:$0xff]  }
 0x1df   :  { %3581 = vmatprep.subr.bf16.mxu0 %v5958_v14  ;;  %v6034_v14 = vld [vmem:[#allocation5 + $0xea0] ss:$16 sps:$4 sm:$0xff]  }
 0x1e1   :  { %3840 = vmatpush1.bf16.msra.mxu1 %v5959_v18  ;;  %v6045_v18 = vld [vmem:[#allocation5 + $0xacc] ss:$16 sps:$4 sm:$0xff]  }
 0x1e2   :  { %3582 = vmatpush1.bf16.msra.mxu0 %v5956_v17  ;;  %3841 = vmatprep.subr.bf16.mxu1 %v5967_v20  ;;  %v6042_v17 = vld [vmem:[#allocation5 + $0xec4] ss:$16 sps:$4 sm:$0xff]   ;;  %v6043_v20 = vld [vmem:[#allocation5 + $0xac8] ss:$16 sps:$4 sm:$0xff]  }
 0x1e3   :  { %3583 = vmatprep.subr.bf16.mxu0 %v5964_v19  ;;  %v6040_v19 = vld [vmem:[#allocation5 + $0xec0] ss:$16 sps:$4 sm:$0xff]  }
 0x1e5   :  { %3842 = vmatpush1.bf16.msra.mxu1 %v5965_v24  ;;  %v6051_v24 = vld [vmem:[#allocation5 + $0xaec] ss:$16 sps:$4 sm:$0xff]  }
 0x1e6   :  { %3584 = vmatpush1.bf16.msra.mxu0 %v5962_v23  ;;  %3843 = vmatprep.subr.bf16.mxu1 %v5973_v8  ;;  %v6048_v23 = vld [vmem:[#allocation5 + $0xee4] ss:$16 sps:$4 sm:$0xff]   ;;  %v6049_v8 = vld [vmem:[#allocation5 + $0xae8] ss:$16 sps:$4 sm:$0xff]  }
 0x1e7   :  { %3585 = vmatprep.subr.bf16.mxu0 %v5970_v26  ;;  %v6046_v26 = vld [vmem:[#allocation5 + $0xee0] ss:$16 sps:$4 sm:$0xff]  }
 0x1e9   :  { %3844 = vmatpush1.bf16.msra.mxu1 %v5971_v31  ;;  %v6057_v31 = vld [vmem:[#allocation5 + $0xb0c] ss:$16 sps:$4 sm:$0xff]  }
 0x1ea   :  { %3586 = vmatpush1.bf16.msra.mxu0 %v5968_v30  ;;  %3845 = vmatprep.subr.bf16.mxu1 %v5979_v22  ;;  %v6054_v30 = vld [vmem:[#allocation5 + $0xf04] ss:$16 sps:$4 sm:$0xff]   ;;  %v6055_v22 = vld [vmem:[#allocation5 + $0xb08] ss:$16 sps:$4 sm:$0xff]  }
 0x1eb   :  { %3587 = vmatprep.subr.bf16.mxu0 %v5976_v21  ;;  %v6052_v21 = vld [vmem:[#allocation5 + $0xf00] ss:$16 sps:$4 sm:$0xff]  }
 0x1ed   :  { %3846 = vmatpush1.bf16.msra.mxu1 %v5977_v55  ;;  %v6063_v55 = vld [vmem:[#allocation5 + $0xb2c] ss:$16 sps:$4 sm:$0xff]  }
 0x1ee   :  { %3588 = vmatpush1.bf16.msra.mxu0 %v5974_v33  ;;  %3847 = vmatprep.subr.bf16.mxu1 %v5985_v37  ;;  %v6060_v33 = vld [vmem:[#allocation5 + $0xf24] ss:$16 sps:$4 sm:$0xff]   ;;  %v6061_v37 = vld [vmem:[#allocation5 + $0xb28] ss:$16 sps:$4 sm:$0xff]  }
 0x1ef   :  { %3589 = vmatprep.subr.bf16.mxu0 %v5982_v9  ;;  %v6058_v9 = vld [vmem:[#allocation5 + $0xf20] ss:$16 sps:$4 sm:$0xff]  }
 0x1f1   :  { %3848 = vmatpush1.bf16.msra.mxu1 %v5983_v29  ;;  %v6069_v29 = vld [vmem:[#allocation5 + $0xb4c] ss:$16 sps:$4 sm:$0xff]  }
 0x1f2   :  { %3590 = vmatpush1.bf16.msra.mxu0 %v5980_v28  ;;  %3849 = vmatprep.subr.bf16.mxu1 %v5991_v41  ;;  %v6066_v28 = vld [vmem:[#allocation5 + $0xf44] ss:$16 sps:$4 sm:$0xff]   ;;  %v6067_v41 = vld [vmem:[#allocation5 + $0xb48] ss:$16 sps:$4 sm:$0xff]  }
 0x1f3   :  { %3591 = vmatprep.subr.bf16.mxu0 %v5988_v40  ;;  %v6064_v40 = vld [vmem:[#allocation5 + $0xf40] ss:$16 sps:$4 sm:$0xff]  }
 0x1f5   :  { %3850 = vmatpush1.bf16.msra.mxu1 %v5989_v38  ;;  %v6075_v38 = vld [vmem:[#allocation5 + $0xb6c] ss:$16 sps:$4 sm:$0xff]  }
 0x1f6   :  { %3592 = vmatpush1.bf16.msra.mxu0 %v5986_v42  ;;  %3851 = vmatprep.subr.bf16.mxu1 %v5997_v16  ;;  %v6072_v42 = vld [vmem:[#allocation5 + $0xf64] ss:$16 sps:$4 sm:$0xff]   ;;  %v6073_v16 = vld [vmem:[#allocation5 + $0xb68] ss:$16 sps:$4 sm:$0xff]  }
 0x1f7   :  { %3593 = vmatprep.subr.bf16.mxu0 %v5994_v43  ;;  %v6070_v43 = vld [vmem:[#allocation5 + $0xf60] ss:$16 sps:$4 sm:$0xff]  }
 0x1f9   :  { %3852 = vmatpush1.bf16.msra.mxu1 %v5995_v48  ;;  %v6081_v48 = vld [vmem:[#allocation5 + $0xb8c] ss:$16 sps:$4 sm:$0xff]  }
 0x1fa   :  { %3594 = vmatpush1.bf16.msra.mxu0 %v5992_v45  ;;  %3853 = vmatprep.subr.bf16.mxu1 %v6003_v49  ;;  %v6078_v45 = vld [vmem:[#allocation5 + $0xf84] ss:$16 sps:$4 sm:$0xff]   ;;  %v6079_v49 = vld [vmem:[#allocation5 + $0xb88] ss:$16 sps:$4 sm:$0xff]  }
 0x1fb   :  { %3595 = vmatprep.subr.bf16.mxu0 %v6000_v25  ;;  %v6076_v25 = vld [vmem:[#allocation5 + $0xf80] ss:$16 sps:$4 sm:$0xff]  }
 0x1fd   :  { %3854 = vmatpush1.bf16.msra.mxu1 %v6001_v36  ;;  %v6087_v36 = vld [vmem:[#allocation5 + $0xbac] ss:$16 sps:$4 sm:$0xff]  }
 0x1fe   :  { %3596 = vmatpush1.bf16.msra.mxu0 %v5998_v34  ;;  %3866 = vmatprep.subr.bf16.mxu1 %v6009_v52  ;;  %v6084_v34 = vld [vmem:[#allocation5 + $0xfa4] ss:$16 sps:$4 sm:$0xff]   ;;  %v6085_v52 = vld [vmem:[#allocation5 + $0xba8] ss:$16 sps:$4 sm:$0xff]  }
 0x1ff   :  { %3608 = vmatprep.subr.bf16.mxu0 %v6006_v51  ;;  %v6082_v51 = vld [vmem:[#allocation5 + $0xfa0] ss:$16 sps:$4 sm:$0xff]  }
 0x200   :  { %3856 = vmatmul.mubr.bf16.vlgmr.msra.gmra.mrb[4].mxu1 %v6691_v35  ;;  %v6027_v35 = vld [vmem:[#allocation5 + $0xa6c] ss:$16 sps:$4 sm:$0xff]  }
 0x201   :  { %3598 = vmatmul.mubr.bf16.vlgmr.msra.gmra.mrb[0].mxu0 %v6729_v53  ;;  %3867 = vmatpush1.bf16.msra.mxu1 %v6007_v60  ;;  %v6093_v60 = vld [vmem:[#allocation5 + $0xbcc] ss:$16 sps:$4 sm:$0xff]  }
 0x202   :  { %3609 = vmatpush1.bf16.msra.mxu0 %v6004_v27  ;;  %3868 = vmatprep.subr.bf16.mxu1 %v6015_v63  ;;  %v6090_v27 = vld [vmem:[#allocation5 + $0xfc4] ss:$16 sps:$4 sm:$0xff]   ;;  %v6091_v63 = vld [vmem:[#allocation5 + $0xbc8] ss:$16 sps:$4 sm:$0xff]  }
 0x203   :  { %3610 = vmatprep.subr.bf16.mxu0 %v6012_v62  ;;  %3640 = vmatprep.mubr.bf16.mxu0 %v6737_v0  ;;  %v6088_v62 = vld [vmem:[#allocation5 + $0xfc0] ss:$16 sps:$4 sm:$0xff]  }
 0x204   :  { %3898 = vmatprep.mubr.bf16.mxu1 %v6697_v39  ;;  %v6031_v39 = vld [vmem:[#allocation5 + $0xa88] ss:$16 sps:$4 sm:$0xff]  }
 0x205   :  { %3869 = vmatpush1.bf16.msra.mxu1 %v6013_v47  ;;  %v6099_v47 = vld [vmem:[#allocation5 + $0xbec] ss:$16 sps:$4 sm:$0xff]  }
 0x206   :  { %3611 = vmatpush1.bf16.msra.mxu0 %v6010_v46  ;;  %3870 = vmatprep.subr.bf16.mxu1 %v6021_v32  ;;  %v6096_v46 = vld [vmem:[#allocation5 + $0xfe4] ss:$16 sps:$4 sm:$0xff]   ;;  %v6097_v32 = vld [vmem:[#allocation5 + $0xbe8] ss:$16 sps:$4 sm:$0xff]  }
 0x207   :  { %3612 = vmatprep.subr.bf16.mxu0 %v6018_v1  ;;  %v6094_v1 = vld [vmem:[#allocation5 + $0xfe0] ss:$16 sps:$4 sm:$0xff]  }
 0x209   :  { %3871 = vmatpush1.bf16.msra.mxu1 %v6019_v3  ;;  %v6745_v3 = vcombine.low %v6731_v54, %v6733_v59  ;;  %v6199_v54 = vld [vmem:[#allocation8 + $0x10] ss:$8 sps:$4 sm:$0xff]   ;;  %v6204_v59 = vld [vmem:[#allocation8 + $0x24] ss:$8 sps:$4 sm:$0xff]  }
 0x20a   :  { %3613 = vmatpush1.bf16.msra.mxu0 %v6016_v2  ;;  %3872 = vmatprep.subr.bf16.mxu1 %v6027_v35  ;;  %v6102_v2 = vld [vmem:[#allocation5 + $0xc0c] ss:$16 sps:$4 sm:$0xff]  }
 0x20b   :  { %3614 = vmatprep.subr.bf16.mxu0 %v6024_v4  ;;  %v6100_v4 = vld [vmem:[#allocation5 + $0xc08] ss:$16 sps:$4 sm:$0xff]   ;;  %v6105_v35 = vld [vmem:[#allocation5 + $0xc2c] ss:$16 sps:$4 sm:$0xff]  }
 0x20d   :  { %3873 = vmatpush1.bf16.msra.mxu1 %v6025_v6  ;;  %v6198_v6 = vld [vmem:[#allocation8 + $0x4] ss:$8 sps:$4 sm:$0xff]  }
 0x20e   :  { %3615 = vmatpush1.bf16.msra.mxu0 %v6022_v5  ;;  %3874 = vmatprep.subr.bf16.mxu1 %v6033_v10  ;;  %v6196_v5 = vld [vmem:[#allocation8] ss:$8 sps:$4 sm:$0xff]   ;;  %v6201_v10 = vld [vmem:[#allocation8 + $0x14] ss:$8 sps:$4 sm:$0xff]  }
 0x20f   :  { %3616 = vmatprep.subr.bf16.mxu0 %v6030_v7  ;;  %v6103_v7 = vld [vmem:[#allocation5 + $0xc28] ss:$16 sps:$4 sm:$0xff]  }
 0x211   :  { %3875 = vmatpush1.bf16.msra.mxu1 %v6031_v39  ;;  %v6106_v39 = vld [vmem:[#allocation5 + $0xc48] ss:$16 sps:$4 sm:$0xff]  }
 0x212   :  { %3617 = vmatpush1.bf16.msra.mxu0 %v6028_v11  ;;  %3876 = vmatprep.subr.bf16.mxu1 %v6039_v13  ;;  %v6108_v11 = vld [vmem:[#allocation5 + $0xc4c] ss:$16 sps:$4 sm:$0xff]   ;;  %v6207_v13 = vld [vmem:[#allocation8 + $0x34] ss:$8 sps:$4 sm:$0xff]  }
 0x213   :  { %3618 = vmatprep.subr.bf16.mxu0 %v6036_v12  ;;  %v6111_v12 = vld [vmem:[#allocation5 + $0xc6c] ss:$16 sps:$4 sm:$0xff]  }
 0x215   :  { %3877 = vmatpush1.bf16.msra.mxu1 %v6037_v15  ;;  %v6205_v15 = vld [vmem:[#allocation8 + $0x30] ss:$8 sps:$4 sm:$0xff]  }
 0x216   :  { %3619 = vmatpush1.bf16.msra.mxu0 %v6034_v14  ;;  %3878 = vmatprep.subr.bf16.mxu1 %v6045_v18  ;;  %v6109_v14 = vld [vmem:[#allocation5 + $0xc68] ss:$16 sps:$4 sm:$0xff]  }
 0x217   :  { %3620 = vmatprep.subr.bf16.mxu0 %v6042_v17  ;;  %v6210_v17 = vld [vmem:[#allocation8 + $0x44] ss:$8 sps:$4 sm:$0xff]  }
 0x218   :  { %v6112_v18 = vld [vmem:[#allocation5 + $0xc88] ss:$16 sps:$4 sm:$0xff]  }
 0x219   :  { %3879 = vmatpush1.bf16.msra.mxu1 %v6043_v20  ;;  %v6208_v20 = vld [vmem:[#allocation8 + $0x40] ss:$8 sps:$4 sm:$0xff]  }
 0x21a   :  { %3621 = vmatpush1.bf16.msra.mxu0 %v6040_v19  ;;  %3880 = vmatprep.subr.bf16.mxu1 %v6051_v24  ;;  %v6117_v19 = vld [vmem:[#allocation5 + $0xcac] ss:$16 sps:$4 sm:$0xff]   ;;  %v6115_v24 = vld [vmem:[#allocation5 + $0xca8] ss:$16 sps:$4 sm:$0xff]  }
 0x21b   :  { %3622 = vmatprep.subr.bf16.mxu0 %v6048_v23  ;;  %v6213_v23 = vld [vmem:[#allocation8 + $0x54] ss:$8 sps:$4 sm:$0xff]  }
 0x21d   :  { %3881 = vmatpush1.bf16.msra.mxu1 %v6049_v8  ;;  %v6211_v8 = vld [vmem:[#allocation8 + $0x50] ss:$8 sps:$4 sm:$0xff]  }
 0x21e   :  { %3623 = vmatpush1.bf16.msra.mxu0 %v6046_v26  ;;  %3882 = vmatprep.subr.bf16.mxu1 %v6057_v31  ;;  %v6120_v26 = vld [vmem:[#allocation5 + $0xccc] ss:$16 sps:$4 sm:$0xff]   ;;  %v6118_v31 = vld [vmem:[#allocation5 + $0xcc8] ss:$16 sps:$4 sm:$0xff]  }
 0x21f   :  { %3624 = vmatprep.subr.bf16.mxu0 %v6054_v30  ;;  %v6216_v30 = vld [vmem:[#allocation8 + $0x64] ss:$8 sps:$4 sm:$0xff]  }
 0x221   :  { %3883 = vmatpush1.bf16.msra.mxu1 %v6055_v22  ;;  %v6214_v22 = vld [vmem:[#allocation8 + $0x60] ss:$8 sps:$4 sm:$0xff]  }
 0x222   :  { %3625 = vmatpush1.bf16.msra.mxu0 %v6052_v21  ;;  %3884 = vmatprep.subr.bf16.mxu1 %v6063_v55  ;;  %v6123_v21 = vld [vmem:[#allocation5 + $0xcec] ss:$16 sps:$4 sm:$0xff]   ;;  %v6121_v55 = vld [vmem:[#allocation5 + $0xce8] ss:$16 sps:$4 sm:$0xff]  }
 0x223   :  { %3626 = vmatprep.subr.bf16.mxu0 %v6060_v33  ;;  %v6219_v33 = vld [vmem:[#allocation8 + $0x74] ss:$8 sps:$4 sm:$0xff]  }
 0x225   :  { %3885 = vmatpush1.bf16.msra.mxu1 %v6061_v37  ;;  %v6217_v37 = vld [vmem:[#allocation8 + $0x70] ss:$8 sps:$4 sm:$0xff]  }
 0x226   :  { %3627 = vmatpush1.bf16.msra.mxu0 %v6058_v9  ;;  %3886 = vmatprep.subr.bf16.mxu1 %v6069_v29  ;;  %v6126_v9 = vld [vmem:[#allocation5 + $0xd0c] ss:$16 sps:$4 sm:$0xff]   ;;  %v6124_v29 = vld [vmem:[#allocation5 + $0xd08] ss:$16 sps:$4 sm:$0xff]  }
 0x227   :  { %3628 = vmatprep.subr.bf16.mxu0 %v6066_v28  ;;  %v6222_v28 = vld [vmem:[#allocation8 + $0x84] ss:$8 sps:$4 sm:$0xff]  }
 0x229   :  { %3887 = vmatpush1.bf16.msra.mxu1 %v6067_v41  ;;  %v6220_v41 = vld [vmem:[#allocation8 + $0x80] ss:$8 sps:$4 sm:$0xff]  }
 0x22a   :  { %3629 = vmatpush1.bf16.msra.mxu0 %v6064_v40  ;;  %3888 = vmatprep.subr.bf16.mxu1 %v6075_v38  ;;  %v6129_v40 = vld [vmem:[#allocation5 + $0xd2c] ss:$16 sps:$4 sm:$0xff]   ;;  %v6127_v38 = vld [vmem:[#allocation5 + $0xd28] ss:$16 sps:$4 sm:$0xff]  }
 0x22b   :  { %3630 = vmatprep.subr.bf16.mxu0 %v6072_v42  ;;  %v6225_v42 = vld [vmem:[#allocation8 + $0x94] ss:$8 sps:$4 sm:$0xff]  }
 0x22d   :  { %3889 = vmatpush1.bf16.msra.mxu1 %v6073_v16  ;;  %v6223_v16 = vld [vmem:[#allocation8 + $0x90] ss:$8 sps:$4 sm:$0xff]  }
 0x22e   :  { %3631 = vmatpush1.bf16.msra.mxu0 %v6070_v43  ;;  %3890 = vmatprep.subr.bf16.mxu1 %v6081_v48  ;;  %v6132_v43 = vld [vmem:[#allocation5 + $0xd4c] ss:$16 sps:$4 sm:$0xff]   ;;  %v6130_v48 = vld [vmem:[#allocation5 + $0xd48] ss:$16 sps:$4 sm:$0xff]  }
 0x22f   :  { %3632 = vmatprep.subr.bf16.mxu0 %v6078_v45  ;;  %v6228_v45 = vld [vmem:[#allocation8 + $0xa4] ss:$8 sps:$4 sm:$0xff]  }
 0x231   :  { %3891 = vmatpush1.bf16.msra.mxu1 %v6079_v49  ;;  %v6226_v49 = vld [vmem:[#allocation8 + $0xa0] ss:$8 sps:$4 sm:$0xff]  }
 0x232   :  { %3633 = vmatpush1.bf16.msra.mxu0 %v6076_v25  ;;  %3892 = vmatprep.subr.bf16.mxu1 %v6087_v36  ;;  %v6135_v25 = vld [vmem:[#allocation5 + $0xd6c] ss:$16 sps:$4 sm:$0xff]   ;;  %v6133_v36 = vld [vmem:[#allocation5 + $0xd68] ss:$16 sps:$4 sm:$0xff]  }
 0x233   :  { %3634 = vmatprep.subr.bf16.mxu0 %v6084_v34  ;;  %v6231_v34 = vld [vmem:[#allocation8 + $0xb4] ss:$8 sps:$4 sm:$0xff]  }
 0x235   :  { %3893 = vmatpush1.bf16.msra.mxu1 %v6085_v52  ;;  %v6229_v52 = vld [vmem:[#allocation8 + $0xb0] ss:$8 sps:$4 sm:$0xff]  }
 0x236   :  { %3635 = vmatpush1.bf16.msra.mxu0 %v6082_v51  ;;  %3894 = vmatprep.subr.bf16.mxu1 %v6093_v60  ;;  %v6138_v51 = vld [vmem:[#allocation5 + $0xd8c] ss:$16 sps:$4 sm:$0xff]   ;;  %v6136_v60 = vld [vmem:[#allocation5 + $0xd88] ss:$16 sps:$4 sm:$0xff]  }
 0x237   :  { %3636 = vmatprep.subr.bf16.mxu0 %v6090_v27  ;;  %v6234_v27 = vld [vmem:[#allocation8 + $0xc4] ss:$8 sps:$4 sm:$0xff]  }
 0x239   :  { %3895 = vmatpush1.bf16.msra.mxu1 %v6091_v63  ;;  %v6232_v63 = vld [vmem:[#allocation8 + $0xc0] ss:$8 sps:$4 sm:$0xff]  }
 0x23a   :  { %3637 = vmatpush1.bf16.msra.mxu0 %v6088_v62  ;;  %3896 = vmatprep.subr.bf16.mxu1 %v6099_v47  ;;  %v6141_v62 = vld [vmem:[#allocation5 + $0xdac] ss:$16 sps:$4 sm:$0xff]   ;;  %v6139_v47 = vld [vmem:[#allocation5 + $0xda8] ss:$16 sps:$4 sm:$0xff]  }
 0x23b   :  { %3638 = vmatprep.subr.bf16.mxu0 %v6096_v46  ;;  %v6237_v46 = vld [vmem:[#allocation8 + $0xd4] ss:$8 sps:$4 sm:$0xff]  }
 0x23d   :  { %3897 = vmatpush1.bf16.msra.mxu1 %v6097_v32  ;;  %v6235_v32 = vld [vmem:[#allocation8 + $0xd0] ss:$8 sps:$4 sm:$0xff]  }
 0x23e   :  { %3639 = vmatpush1.bf16.msra.mxu0 %v6094_v1  ;;  %3909 = vmatprep.subr.bf16.mxu1 %v6102_v2  ;;  %v6144_v1 = vld [vmem:[#allocation5 + $0xdcc] ss:$16 sps:$4 sm:$0xff]   ;;  %v6142_v2 = vld [vmem:[#allocation5 + $0xdc8] ss:$16 sps:$4 sm:$0xff]  }
 0x23f   :  { %4403 = vmatprep.subr.bf16.mxu0 %v6198_v6  ;;  %v6148_v6 = vld [vmem:[#allocation5 + $0xe08] ss:$16 sps:$4 sm:$0xff]  }
 0x240   :  { %3899 = vmatmul.mubr.bf16.vlgmr.msra.gmra.mrb[4].mxu1 %v6713_v44  ;;  %v6202_v44 = vld [vmem:[#allocation8 + $0x20] ss:$8 sps:$4 sm:$0xff]  }
 0x241   :  { %3641 = vmatmul.mubr.bf16.vlgmr.msra.gmra.mrb[0].mxu0 %v6745_v3  ;;  %3910 = vmatpush1.bf16.msra.mxu1 %v6100_v4  ;;  %v6147_v4 = vld [vmem:[#allocation5 + $0xdec] ss:$16 sps:$4 sm:$0xff]  }
 0x242   :  { %3941 = vmatprep.mubr.bf16.mxu1 %v6721_v50  ;;  %3911 = vmatprep.subr.bf16.mxu1 %v6105_v35  ;;  %v6114_v50 = vld [vmem:[#allocation5 + $0xc8c] ss:$16 sps:$4 sm:$0xff]   ;;  %v6145_v35 = vld [vmem:[#allocation5 + $0xde8] ss:$16 sps:$4 sm:$0xff]  }
 0x243   :  { %4404 = vmatpush1.bf16.msra.mxu0 %v6196_v5  ;;  %v6150_v5 = vld [vmem:[#allocation5 + $0xe0c] ss:$16 sps:$4 sm:$0xff]  }
 0x244   :  { %4405 = vmatprep.subr.bf16.mxu0 %v6201_v10  ;;  %v6151_v10 = vld [vmem:[#allocation5 + $0xe28] ss:$16 sps:$4 sm:$0xff]  }
 0x245   :  { %3912 = vmatpush1.bf16.msra.mxu1 %v6103_v7  ;;  %v6153_v7 = vld [vmem:[#allocation5 + $0xe2c] ss:$16 sps:$4 sm:$0xff]  }
 0x246   :  { %3913 = vmatprep.subr.bf16.mxu1 %v6108_v11  ;;  %v6156_v11 = vld [vmem:[#allocation5 + $0xe4c] ss:$16 sps:$4 sm:$0xff]  }
 0x247   :  { %4406 = vmatpush1.bf16.msra.mxu0 %v6199_v54  ;;  %v6154_v54 = vld [vmem:[#allocation5 + $0xe48] ss:$16 sps:$4 sm:$0xff]  }
 0x248   :  { %4407 = vmatprep.subr.bf16.mxu0 %v6204_v59  ;;  %v6159_v59 = vld [vmem:[#allocation5 + $0xe6c] ss:$16 sps:$4 sm:$0xff]  }
 0x249   :  { %3914 = vmatpush1.bf16.msra.mxu1 %v6106_v39  ;;  %v6157_v39 = vld [vmem:[#allocation5 + $0xe68] ss:$16 sps:$4 sm:$0xff]  }
 0x24a   :  { %3915 = vmatprep.subr.bf16.mxu1 %v6111_v12  ;;  %v6162_v12 = vld [vmem:[#allocation5 + $0xe8c] ss:$16 sps:$4 sm:$0xff]  }
 0x24b   :  { %4408 = vmatpush1.bf16.msra.mxu0 %v6202_v44  ;;  %v6160_v44 = vld [vmem:[#allocation5 + $0xe88] ss:$16 sps:$4 sm:$0xff]  }
 0x24c   :  { %4409 = vmatprep.subr.bf16.mxu0 %v6207_v13  ;;  %v6165_v13 = vld [vmem:[#allocation5 + $0xeac] ss:$16 sps:$4 sm:$0xff]  }
 0x24d   :  { %3916 = vmatpush1.bf16.msra.mxu1 %v6109_v14  ;;  %v6168_v14 = vld [vmem:[#allocation5 + $0xecc] ss:$16 sps:$4 sm:$0xff]  }
 0x24e   :  { %3917 = vmatprep.subr.bf16.mxu1 %v6114_v50  ;;  %v6240_v50 = vld [vmem:[#allocation8 + $0xe4] ss:$8 sps:$4 sm:$0xff]  }
 0x24f   :  { %4410 = vmatpush1.bf16.msra.mxu0 %v6205_v15  ;;  %v6238_v15 = vld [vmem:[#allocation8 + $0xe0] ss:$8 sps:$4 sm:$0xff]  }
 0x250   :  { %4411 = vmatprep.subr.bf16.mxu0 %v6210_v17  ;;  %v6171_v17 = vld [vmem:[#allocation5 + $0xeec] ss:$16 sps:$4 sm:$0xff]  }
 0x251   :  { %3918 = vmatpush1.bf16.msra.mxu1 %v6112_v18  ;;  %v6243_v18 = vld [vmem:[#allocation8 + $0xf4] ss:$8 sps:$4 sm:$0xff]  }
 0x252   :  { %3919 = vmatprep.subr.bf16.mxu1 %v6117_v19  ;;  %v6169_v19 = vld [vmem:[#allocation5 + $0xee8] ss:$16 sps:$4 sm:$0xff]  }
 0x253   :  { %4412 = vmatpush1.bf16.msra.mxu0 %v6208_v20  ;;  %v6241_v20 = vld [vmem:[#allocation8 + $0xf0] ss:$8 sps:$4 sm:$0xff]  }
 0x254   :  { %4413 = vmatprep.subr.bf16.mxu0 %v6213_v23  ;;  %v6174_v23 = vld [vmem:[#allocation5 + $0xf0c] ss:$16 sps:$4 sm:$0xff]  }
 0x255   :  { %3920 = vmatpush1.bf16.msra.mxu1 %v6115_v24  ;;  %v6172_v24 = vld [vmem:[#allocation5 + $0xf08] ss:$16 sps:$4 sm:$0xff]  }
 0x256   :  { %3921 = vmatprep.subr.bf16.mxu1 %v6120_v26  ;;  %v6177_v26 = vld [vmem:[#allocation5 + $0xf2c] ss:$16 sps:$4 sm:$0xff]  }
 0x257   :  { %4414 = vmatpush1.bf16.msra.mxu0 %v6211_v8  ;;  %v6246_v8 = vld [vmem:[#allocation8 + $0x104] ss:$8 sps:$4 sm:$0xff]  }
 0x258   :  { %4415 = vmatprep.subr.bf16.mxu0 %v6216_v30  ;;  %v6175_v30 = vld [vmem:[#allocation5 + $0xf28] ss:$16 sps:$4 sm:$0xff]  }
 0x259   :  { %3922 = vmatpush1.bf16.msra.mxu1 %v6118_v31  ;;  %v6180_v31 = vld [vmem:[#allocation5 + $0xf4c] ss:$16 sps:$4 sm:$0xff]  }
 0x25a   :  { %3923 = vmatprep.subr.bf16.mxu1 %v6123_v21  ;;  %v6178_v21 = vld [vmem:[#allocation5 + $0xf48] ss:$16 sps:$4 sm:$0xff]  }
 0x25b   :  { %4416 = vmatpush1.bf16.msra.mxu0 %v6214_v22  ;;  %v6183_v22 = vld [vmem:[#allocation5 + $0xf6c] ss:$16 sps:$4 sm:$0xff]  }
 0x25c   :  { %4417 = vmatprep.subr.bf16.mxu0 %v6219_v33  ;;  %v6181_v33 = vld [vmem:[#allocation5 + $0xf68] ss:$16 sps:$4 sm:$0xff]  }
 0x25d   :  { %3924 = vmatpush1.bf16.msra.mxu1 %v6121_v55  ;;  %v6186_v55 = vld [vmem:[#allocation5 + $0xf8c] ss:$16 sps:$4 sm:$0xff]  }
 0x25e   :  { %3925 = vmatprep.subr.bf16.mxu1 %v6126_v9  ;;  %v6184_v9 = vld [vmem:[#allocation5 + $0xf88] ss:$16 sps:$4 sm:$0xff]  }
 0x25f   :  { %4418 = vmatpush1.bf16.msra.mxu0 %v6217_v37  ;;  %v6189_v37 = vld [vmem:[#allocation5 + $0xfac] ss:$16 sps:$4 sm:$0xff]  }
 0x260   :  { %4419 = vmatprep.subr.bf16.mxu0 %v6222_v28  ;;  %v6187_v28 = vld [vmem:[#allocation5 + $0xfa8] ss:$16 sps:$4 sm:$0xff]  }
 0x261   :  { %3926 = vmatpush1.bf16.msra.mxu1 %v6124_v29  ;;  %v6192_v29 = vld [vmem:[#allocation5 + $0xfcc] ss:$16 sps:$4 sm:$0xff]  }
 0x262   :  { %3927 = vmatprep.subr.bf16.mxu1 %v6129_v40  ;;  %v6190_v40 = vld [vmem:[#allocation5 + $0xfc8] ss:$16 sps:$4 sm:$0xff]  }
 0x263   :  { %4420 = vmatpush1.bf16.msra.mxu0 %v6220_v41  ;;  %v6195_v41 = vld [vmem:[#allocation5 + $0xfec] ss:$16 sps:$4 sm:$0xff]  }
 0x264   :  { %4421 = vmatprep.subr.bf16.mxu0 %v6225_v42  ;;  %v6193_v42 = vld [vmem:[#allocation5 + $0xfe8] ss:$16 sps:$4 sm:$0xff]  }
 0x265   :  { %3928 = vmatpush1.bf16.msra.mxu1 %v6127_v38  ;;  %v647_v38 = vlaneseq }
 0x266   :  { %3929 = vmatprep.subr.bf16.mxu1 %v6132_v43 }
 0x267   :  { %4422 = vmatpush1.bf16.msra.mxu0 %v6223_v16  ;;  %v6753_v43 = vshrl.u32 %v647_v38, 7  ;;  %v6286_v38 = vld [vmem:[#allocation8 + $0x1e0] ss:$8 sps:$4 sm:$0xff]  }
 0x268   :  { %4423 = vmatprep.subr.bf16.mxu0 %v6228_v45  ;;  %v6756_v45 = vld [vmem:[#allocation7] sm:$0xf] }
 0x269   :  { %3930 = vmatpush1.bf16.msra.mxu1 %v6130_v48  ;;  %v649_v16 = vsub.s32 0, %v6753_v43  ;;  %v653_v48 = vsub.s32 1, %v6753_v43 }
 0x26a   :  { %3931 = vmatprep.subr.bf16.mxu1 %v6135_v25 }
 0x26b   :  { %4424 = vmatpush1.bf16.msra.mxu0 %v6226_v49  ;;  %v650_v25 = vrot.slane %v6756_v45, %v649_v16  ;;  %v654_v49 = vrot.slane %v6756_v45, %v653_v48 }
 0x26c   :  { %4425 = vmatprep.subr.bf16.mxu0 %v6231_v34 }
 0x26d   :  { %3932 = vmatpush1.bf16.msra.mxu1 %v6133_v36  ;;  %v3342_v34 = vadd.f32 %v6703_v56, %v650_v25 }
 0x26e   :  { %3933 = vmatprep.subr.bf16.mxu1 %v6138_v51  ;;  %v3346_v51 = vadd.f32 %v6707_v58, %v650_v25  ;;  %v6292_v58 = vld [vmem:[#allocation11 + $0x40] sm:$0xff]   ;;  %v6291_v25 = vld [vmem:[#allocation8 + $0x1f4] ss:$8 sps:$4 sm:$0xff]  }
 0x26f   :  { %4426 = vmatpush1.bf16.msra.mxu0 %v6229_v52 }
 0x270   :  { %4427 = vmatprep.subr.bf16.mxu0 %v6234_v27 }
 0x271   :  { %3934 = vmatpush1.bf16.msra.mxu1 %v6136_v60  ;;  %v3348_v60 = vadd.f32 %v6709_v61, %v654_v49  ;;  %v6247_v61 = vld [vmem:[#allocation8 + $0x110] ss:$8 sps:$4 sm:$0xff]  }
 0x272   :  { %3935 = vmatprep.subr.bf16.mxu1 %v6141_v62 }
 0x273   :  { %4428 = vmatpush1.bf16.msra.mxu0 %v6232_v63 }
 0x274   :  { %4429 = vmatprep.subr.bf16.mxu0 %v6237_v46 }
 0x275   :  { %3936 = vmatpush1.bf16.msra.mxu1 %v6139_v47 }
 0x276   :  { %3937 = vmatprep.subr.bf16.mxu1 %v6144_v1 }
 0x277   :  { %4430 = vmatpush1.bf16.msra.mxu0 %v6235_v32 }
 0x278   :  { %4431 = vmatprep.subr.bf16.mxu0 %v6240_v50  ;;  %v6299_v50 = vld [vmem:[#allocation11 + $0x18] sm:$0xff]  }
 0x279   :  { %3938 = vmatpush1.bf16.msra.mxu1 %v6142_v2 }
 0x27a   :  { %3939 = vmatprep.subr.bf16.mxu1 %v6147_v4 }
 0x27b   :  { %4432 = vmatpush1.bf16.msra.mxu0 %v6238_v15  ;;  %v6256_v15 = vld [vmem:[#allocation8 + $0x140] ss:$8 sps:$4 sm:$0xff]  }
 0x27c   :  { %4433 = vmatprep.subr.bf16.mxu0 %v6243_v18  ;;  %v6301_v18 = vld [vmem:[#allocation11 + $0x20] sm:$0xff]  }
 0x27d   :  { %3940 = vmatpush1.bf16.msra.mxu1 %v6145_v35 }
 0x27e   :  { %3952 = vmatprep.subr.bf16.mxu1 %v6150_v5 }
 0x27f   :  { %4434 = vmatpush1.bf16.msra.mxu0 %v6241_v20  ;;  %v6259_v20 = vld [vmem:[#allocation8 + $0x150] ss:$8 sps:$4 sm:$0xff]  }
 0x280   :  { %3942 = vmatmul.mubr.bf16.vlgmr.msra.gmra.mrb[4].mxu1 %v6729_v53  ;;  %v6163_v53 = vld [vmem:[#allocation5 + $0xea8] ss:$16 sps:$4 sm:$0xff]   ;;  %4446 = vmatprep.subr.bf16.mxu0 %v6246_v8  ;;  %v6265_v8 = vld [vmem:[#allocation8 + $0x170] ss:$8 sps:$4 sm:$0xff]  }
 0x281   :  { %3953 = vmatpush1.bf16.msra.mxu1 %v6148_v6  ;;  %3984 = vmatprep.mubr.bf16.mxu1 %v6737_v0  ;;  %v6166_v0 = vld [vmem:[#allocation5 + $0xec8] ss:$16 sps:$4 sm:$0xff]   ;;  %v6244_v6 = vld [vmem:[#allocation8 + $0x100] ss:$8 sps:$4 sm:$0xff]  }
 0x282   :  { %3954 = vmatprep.subr.bf16.mxu1 %v6153_v7  ;;  %v6293_v7 = vld [vmem:[#allocation11] sm:$0xff]  }
 0x285   :  { %3955 = vmatpush1.bf16.msra.mxu1 %v6151_v10  ;;  %v6294_v10 = vld [vmem:[#allocation11 + $0x48] sm:$0xff]  }
 0x286   :  { %3956 = vmatprep.subr.bf16.mxu1 %v6156_v11  ;;  %v6252_v11 = vld [vmem:[#allocation8 + $0x124] ss:$8 sps:$4 sm:$0xff]  }
 0x289   :  { %3957 = vmatpush1.bf16.msra.mxu1 %v6154_v54  ;;  %v6295_v54 = vld [vmem:[#allocation11 + $0x8] sm:$0xff]  }
 0x28a   :  { %3958 = vmatprep.subr.bf16.mxu1 %v6159_v59  ;;  %v6296_v59 = vld [vmem:[#allocation11 + $0x50] sm:$0xff]  }
 0x28d   :  { %3959 = vmatpush1.bf16.msra.mxu1 %v6157_v39  ;;  %v6250_v39 = vld [vmem:[#allocation8 + $0x120] ss:$8 sps:$4 sm:$0xff]  }
 0x28e   :  { %3960 = vmatprep.subr.bf16.mxu1 %v6162_v12  ;;  %v6255_v12 = vld [vmem:[#allocation8 + $0x134] ss:$8 sps:$4 sm:$0xff]  }
 0x291   :  { %3961 = vmatpush1.bf16.msra.mxu1 %v6160_v44  ;;  %v6297_v44 = vld [vmem:[#allocation11 + $0x10] sm:$0xff]  }
 0x292   :  { %3962 = vmatprep.subr.bf16.mxu1 %v6165_v13  ;;  %v6298_v13 = vld [vmem:[#allocation11 + $0x58] sm:$0xff]  }
 0x295   :  { %3963 = vmatpush1.bf16.msra.mxu1 %v6163_v53  ;;  %v6253_v53 = vld [vmem:[#allocation8 + $0x130] ss:$8 sps:$4 sm:$0xff]  }
 0x296   :  { %3964 = vmatprep.subr.bf16.mxu1 %v6168_v14  ;;  %v6258_v14 = vld [vmem:[#allocation8 + $0x144] ss:$8 sps:$4 sm:$0xff]  }
 0x299   :  { %3965 = vmatpush1.bf16.msra.mxu1 %v6166_v0  ;;  %v6300_v0 = vld [vmem:[#allocation11 + $0x60] sm:$0xff]  }
 0x29a   :  { %3966 = vmatprep.subr.bf16.mxu1 %v6171_v17  ;;  %v6261_v17 = vld [vmem:[#allocation8 + $0x154] ss:$8 sps:$4 sm:$0xff]  }
 0x29d   :  { %3967 = vmatpush1.bf16.msra.mxu1 %v6169_v19  ;;  %v6302_v19 = vld [vmem:[#allocation11 + $0x68] sm:$0xff]  }
 0x29e   :  { %3968 = vmatprep.subr.bf16.mxu1 %v6174_v23  ;;  %v6264_v23 = vld [vmem:[#allocation8 + $0x164] ss:$8 sps:$4 sm:$0xff]  }
 0x2a1   :  { %3969 = vmatpush1.bf16.msra.mxu1 %v6172_v24  ;;  %v6262_v24 = vld [vmem:[#allocation8 + $0x160] ss:$8 sps:$4 sm:$0xff]  }
 0x2a2   :  { %3970 = vmatprep.subr.bf16.mxu1 %v6177_v26  ;;  %v6267_v26 = vld [vmem:[#allocation8 + $0x174] ss:$8 sps:$4 sm:$0xff]  }
 0x2a5   :  { %3971 = vmatpush1.bf16.msra.mxu1 %v6175_v30  ;;  %v6270_v30 = vld [vmem:[#allocation8 + $0x184] ss:$8 sps:$4 sm:$0xff]  }
 0x2a6   :  { %3972 = vmatprep.subr.bf16.mxu1 %v6180_v31  ;;  %v6268_v31 = vld [vmem:[#allocation8 + $0x180] ss:$8 sps:$4 sm:$0xff]  }
 0x2a9   :  { %3973 = vmatpush1.bf16.msra.mxu1 %v6178_v21  ;;  %v6273_v21 = vld [vmem:[#allocation8 + $0x194] ss:$8 sps:$4 sm:$0xff]  }
 0x2aa   :  { %3974 = vmatprep.subr.bf16.mxu1 %v6183_v22  ;;  %v6271_v22 = vld [vmem:[#allocation8 + $0x190] ss:$8 sps:$4 sm:$0xff]  }
 0x2ad   :  { %3975 = vmatpush1.bf16.msra.mxu1 %v6181_v33  ;;  %v6276_v33 = vld [vmem:[#allocation8 + $0x1a4] ss:$8 sps:$4 sm:$0xff]  }
 0x2ae   :  { %3976 = vmatprep.subr.bf16.mxu1 %v6186_v55  ;;  %v6274_v55 = vld [vmem:[#allocation8 + $0x1a0] ss:$8 sps:$4 sm:$0xff]  }
 0x2b1   :  { %3977 = vmatpush1.bf16.msra.mxu1 %v6184_v9  ;;  %v6279_v9 = vld [vmem:[#allocation8 + $0x1b4] ss:$8 sps:$4 sm:$0xff]  }
 0x2b2   :  { %3978 = vmatprep.subr.bf16.mxu1 %v6189_v37  ;;  %v6277_v37 = vld [vmem:[#allocation8 + $0x1b0] ss:$8 sps:$4 sm:$0xff]  }
 0x2b5   :  { %3979 = vmatpush1.bf16.msra.mxu1 %v6187_v28  ;;  %v6282_v28 = vld [vmem:[#allocation8 + $0x1c4] ss:$8 sps:$4 sm:$0xff]  }
 0x2b6   :  { %3980 = vmatprep.subr.bf16.mxu1 %v6192_v29  ;;  %v6280_v29 = vld [vmem:[#allocation8 + $0x1c0] ss:$8 sps:$4 sm:$0xff]  }
 0x2b9   :  { %3981 = vmatpush1.bf16.msra.mxu1 %v6190_v40  ;;  %v6285_v40 = vld [vmem:[#allocation8 + $0x1d4] ss:$8 sps:$4 sm:$0xff]  }
 0x2ba   :  { %3982 = vmatprep.subr.bf16.mxu1 %v6195_v41  ;;  %v6283_v41 = vld [vmem:[#allocation8 + $0x1d0] ss:$8 sps:$4 sm:$0xff]  }
 0x2bd   :  { %3983 = vmatpush1.bf16.msra.mxu1 %v6193_v42  ;;  %v6288_v42 = vld [vmem:[#allocation8 + $0x1e4] ss:$8 sps:$4 sm:$0xff]  }
 0x2be   :  { %5319 = vmatprep.subr.bf16.mxu1 %v6292_v58  ;;  %v6306_v58 = vld [vmem:[#allocation11 + $0x78] sm:$0xff]  }
 0x2c0   :  { %3985 = vmatmul.mubr.bf16.vlgmr.msra.gmra.mrb[4].mxu1 %v6745_v3  ;;  %v3344_v3 = vadd.f32 %v6705_v57, %v654_v49  ;;  %v6249_v57 = vld [vmem:[#allocation8 + $0x114] ss:$8 sps:$4 sm:$0xff]   ;;  %v6289_v49 = vld [vmem:[#allocation8 + $0x1f0] ss:$8 sps:$4 sm:$0xff]  }
 0x2c1   :  { %5320 = vmatpush3.bf16.msra.mxu1 %v6293_v7  ;;  %v6307_v7 = vld [vmem:[#allocation11 + $0x38] sm:$0xff]  }
 0x2c2   :  { %5321 = vmatprep.subr.bf16.mxu1 %v6294_v10  ;;  %v4071_v10 = vld [vmem:[#allocation10] sm:$0x3] }
 0x2c5   :  { %5322 = vmatpush3.bf16.msra.mxu1 %v6295_v54 }
 0x2c6   :  { %5323 = vmatprep.subr.bf16.mxu1 %v6296_v59 }
 0x2c9   :  { %5324 = vmatpush3.bf16.msra.mxu1 %v6297_v44 }
 0x2ca   :  { %5325 = vmatprep.subr.bf16.mxu1 %v6298_v13 }
 0x2cd   :  { %5326 = vmatpush3.bf16.msra.mxu1 %v6299_v50 }
 0x2ce   :  { %5327 = vmatprep.subr.bf16.mxu1 %v6300_v0 }
 0x2d1   :  { %5328 = vmatpush3.bf16.msra.mxu1 %v6301_v18 }
 0x2d2   :  { %5329 = vmatprep.subr.bf16.mxu1 %v6302_v19 }
 0x314   :  { %v3642_v36 = vpop.f32.mrb[0].mxu0 }
 0x315   :  { %v5342_v52 = vadd.f32 %v3642_v36, %v3342_v34  ;;  %v3644_v27 = vpop.f32.mrb[1].mxu0  ;;  %v657_v34 = vsub.s32 2, %v6753_v43 }
 0x316   :  { %v5344_v62 = vadd.f32 %v3644_v27, %v3344_v3  ;;  %v3646_v63 = vpop.f32.mrb[2].mxu0  ;;  %v661_v3 = vsub.s32 3, %v6753_v43 }
 0x317   :  { %v5346_v46 = vadd.f32 %v3646_v63, %v3346_v51  ;;  %v3648_v47 = vpop.f32.mrb[3].mxu0  ;;  %v3995_v32 = vmax.f32 %v5342_v52, 0.0  ;;  %v658_v36 = vrot.slane %v6756_v45, %v657_v34 }
 0x318   :  { %v5348_v1 = vadd.f32 %v3648_v47, %v3348_v60  ;;  %v3996_v4 = vmax.f32 %v5344_v62, 0.0  ;;  %v662_v51 = vrot.slane %v6756_v45, %v661_v3  ;;  %v6305_v45 = vld [vmem:[#allocation11 + $0x30] sm:$0xff]  }
 0x319   :  { %v3999_v2 = vmax.f32 %v5346_v46, 0.0 }
 0x31a   :  { %v4000_v35 = vmax.f32 %v5348_v1, 0.0 }
 0x31b   :  { %v4003_v5 = vpack.c.bf16 %v3999_v2, %v3995_v32 }
 0x31c   :  { %v4004_v56 = vpack.c.bf16 %v4000_v35, %v3996_v4 }
 0x31e   :  { %4435 = vmatprep.mubr.bf16.mxu0 %v4004_v56 }
 0x31f   :  { %4436 = vmatmul.mubr.bf16.vlgmr.msra.gmra.mrb[4].mxu0 %v4003_v5 }
 0x320   :  { %4447 = vmatpush1.bf16.msra.mxu0 %v6244_v6  ;;  %v6303_v6 = vld [vmem:[#allocation11 + $0x28] sm:$0xff]  }
 0x321   :  { %4448 = vmatprep.subr.bf16.mxu0 %v6249_v57  ;;  %5330 = vmatpush3.bf16.msra.mxu1 %v6303_v6  ;;  %v6304_v57 = vld [vmem:[#allocation11 + $0x70] sm:$0xff]  }
 0x322   :  { %5331 = vmatprep.subr.bf16.mxu1 %v6304_v57 }
 0x324   :  { %4449 = vmatpush1.bf16.msra.mxu0 %v6247_v61  ;;  %v4076_v61 = vrot.slane %v4071_v10, %v649_v16 }
 0x325   :  { %4450 = vmatprep.subr.bf16.mxu0 %v6252_v11  ;;  %5332 = vmatpush3.bf16.msra.mxu1 %v6305_v45  ;;  %v4080_v11 = vrot.slane %v4071_v10, %v653_v48 }
 0x326   :  { %5333 = vmatprep.subr.bf16.mxu1 %v6306_v58 }
 0x328   :  { %4451 = vmatpush1.bf16.msra.mxu0 %v6250_v39 }
 0x329   :  { %4452 = vmatprep.subr.bf16.mxu0 %v6255_v12  ;;  %5334 = vmatpush3.bf16.msra.mxu1 %v6307_v7 }
 0x32c   :  { %4453 = vmatpush1.bf16.msra.mxu0 %v6253_v53 }
 0x32d   :  { %4454 = vmatprep.subr.bf16.mxu0 %v6258_v14 }
 0x330   :  { %4455 = vmatpush1.bf16.msra.mxu0 %v6256_v15 }
 0x331   :  { %4456 = vmatprep.subr.bf16.mxu0 %v6261_v17 }
 0x334   :  { %4457 = vmatpush1.bf16.msra.mxu0 %v6259_v20 }
 0x335   :  { %4458 = vmatprep.subr.bf16.mxu0 %v6264_v23  ;;  %v5293_v23 = vld [vmem:[#allocation13] ss:$0 sm:$0xff] }
 0x338   :  { %4459 = vmatpush1.bf16.msra.mxu0 %v6262_v24 }
 0x339   :  { %4460 = vmatprep.subr.bf16.mxu0 %v6267_v26 }
 0x33c   :  { %4461 = vmatpush1.bf16.msra.mxu0 %v6265_v8 }
 0x33d   :  { %4462 = vmatprep.subr.bf16.mxu0 %v6270_v30 }
 0x340   :  { %4463 = vmatpush1.bf16.msra.mxu0 %v6268_v31 }
 0x341   :  { %4464 = vmatprep.subr.bf16.mxu0 %v6273_v21 }
 0x344   :  { %4465 = vmatpush1.bf16.msra.mxu0 %v6271_v22 }
 0x345   :  { %4466 = vmatprep.subr.bf16.mxu0 %v6276_v33 }
 0x348   :  { %4467 = vmatpush1.bf16.msra.mxu0 %v6274_v55 }
 0x349   :  { %4468 = vmatprep.subr.bf16.mxu0 %v6279_v9 }
 0x34c   :  { %4469 = vmatpush1.bf16.msra.mxu0 %v6277_v37 }
 0x34d   :  { %4470 = vmatprep.subr.bf16.mxu0 %v6282_v28 }
 0x350   :  { %4471 = vmatpush1.bf16.msra.mxu0 %v6280_v29 }
 0x351   :  { %4472 = vmatprep.subr.bf16.mxu0 %v6285_v40 }
 0x354   :  { %4473 = vmatpush1.bf16.msra.mxu0 %v6283_v41 }
 0x355   :  { %4474 = vmatprep.subr.bf16.mxu0 %v6288_v42 }
 0x358   :  { %4475 = vmatpush1.bf16.msra.mxu0 %v6286_v38 }
 0x359   :  { %4476 = vmatprep.subr.bf16.mxu0 %v6291_v25 }
 0x35c   :  { %4477 = vmatpush1.bf16.msra.mxu0 %v6289_v49 }
 0x393   :  { %v3986_v52 = vpop.f32.mrb[4].mxu1 }
 0x394   :  { %v5349_v27 = vadd.f32 %v3986_v52, %v658_v36  ;;  %v3988_v60 = vpop.f32.mrb[5].mxu1 }
 0x395   :  { %v5350_v62 = vadd.f32 %v3988_v60, %v662_v51  ;;  %v3990_v63 = vpop.f32.mrb[6].mxu1 }
 0x396   :  { %v5351_v46 = vadd.f32 %v3990_v63, %v658_v36  ;;  %v3992_v47 = vpop.f32.mrb[7].mxu1  ;;  %v3997_v32 = vmax.f32 %v5349_v27, 0.0 }
 0x397   :  { %v5352_v1 = vadd.f32 %v3992_v47, %v662_v51  ;;  %v3998_v4 = vmax.f32 %v5350_v62, 0.0 }
 0x398   :  { %v4001_v2 = vmax.f32 %v5351_v46, 0.0 }
 0x399   :  { %v4002_v35 = vmax.f32 %v5352_v1, 0.0 }
 0x39a   :  { %v4005_v5 = vpack.c.bf16 %v4001_v2, %v3997_v32 }
 0x39b   :  { %v4006_v56 = vpack.c.bf16 %v4002_v35, %v3998_v4 }
 0x39d   :  { %4478 = vmatprep.mubr.bf16.mxu0 %v4006_v56 }
 0x39e   :  { %4479 = vmatmul.mubr.bf16.vlgmr.msra.gmra.mrb[4].mxu0 %v4005_v5 }
 0x471   :  { %v4480_v54 = vpop.f32.mrb[4].mxu0 }
 0x472   :  { %v5353_v59 = vadd.f32 %v4480_v54, %v4076_v61  ;;  %v4482_v39 = vpop.f32.mrb[5].mxu0 }
 0x473   :  { %v5354_v12 = vadd.f32 %v4482_v39, %v4080_v11  ;;  %v4484_v44 = vpop.f32.mrb[6].mxu0 }
 0x474   :  { %v5355_v13 = vadd.f32 %v4484_v44, %v4076_v61  ;;  %v4486_v53 = vpop.f32.mrb[7].mxu0  ;;  %v4489_v50 = vmax.f32 %v5353_v59, 0.0 }
 0x475   :  { %v5356_v14 = vadd.f32 %v4486_v53, %v4080_v11  ;;  %v4490_v15 = vmax.f32 %v5354_v12, 0.0 }
 0x476   :  { %v4491_v0 = vmax.f32 %v5355_v13, 0.0 }
 0x477   :  { %v4492_v17 = vmax.f32 %v5356_v14, 0.0 }
 0x478   :  { %v4493_v18 = vpack.c.bf16 %v4491_v0, %v4489_v50 }
 0x479   :  { %v4494_v19 = vpack.c.bf16 %v4492_v17, %v4490_v15 }
 0x47b   :  { %4662 = vmatprep.mubr.bf16.mxu1 %v4494_v19 }
 0x47c   :  { %4663 = vmatmul.mubr.bf16.vlgmr.msra.gmra.mrb[8].mxu1 %v4493_v18 }
 0x54f   :  { %v5335_v16 = vpop.f32.mrb[8].mxu1 }
 0x550   :  { %v5336_v20 = vpop.f32.mrb[9].mxu1 }
 0x551   :  { %v5337_v43 = vadd.f32 %v5336_v20, %v5335_v16  ;;  %v5338_v48 = vpop.f32.mrb[10].mxu1 }
 0x552   :  { %v5339_v24 = vpop.f32.mrb[11].mxu1 }
 0x553   :  { %v5340_v26 = vadd.f32 %v5339_v24, %v5338_v48  ;;  %v4665_v8 = vadd.f32 %v5337_v43, %v5293_v23 }
 0x555   :  { %v4668_v30 = vadd.f32 %v5340_v26, %v5293_v23 }
 0x557   :  { %v5317_v31 = vpack.c.bf16 %v4668_v30, %v4665_v8 }
 0x559   :  { %5318 = vst [vmem:[#allocation14] sm:$0xff] %v5317_v31  }
 0x55a   :  { %6473 = shalt.err (!%p6470_p4)
}
 0x55b   :  { %s6474_s20 = scalar_lea.hbm %s6799_s7, 128 }
 0x55c   :  { %p6475_p5 = scmp.ne.s32.totalorder %s6799_s7, %s6474_s20  ;;  %p6478_p6 = scmp.lt.u32.totalorder %s6474_s20, %s6799_s7 }
 0x55e   :  { %p6480_p7 = pnand %p6478_p6, %p6475_p5 }
 0x560   :  { %6483 = shalt.err (!%p6480_p7)
}
 0x561   :  { %4692 = dma.vmem_to_hbm [thread:$0]  %s4687_s17, 128, %s6799_s7, [#allocation4], %s6501_s3, %s6501_s3, %s6502_s15  }
 0x562   :  { %6492 = dma.done.wait [#allocation4], 128  }
 0x563   :  { %6493 = vsyncadd [#allocation4], 4294967168 }
 0x564   :  { %4696 = vsyncpa [#allocation3], 1 }
 0x565   :  { %4697 = vsyncpa [#allocation6], 1 }
 0x566   :  { %4698 = vsyncpa [#allocation9], 1 }
 0x567   :  { %4699 = vsyncpa [#allocation12], 1 }
 0x568   :  { %4700 = vsyncpa [#allocation4], 1 }

</bundles_post_ra>
